<compile_context>
chip_gen: v7x
topology: tpu7x:2x2x1
jax: 0.10.0
libtpu: 0.0.40
codegen_flags: <defaults>
</compile_context>

<pallas_src>
import jax
import jax.numpy as jnp
from jax.experimental import pallas as pl
from jax.experimental.pallas import tpu as pltpu

NUM_LAYERS = 3
NSYM = 4
S_VALS = (-3.0, -1.0, 1.0, 3.0)        # constellation s


def _dnn_smpd3_kernel(z_ref, Jt_ref, Jd_ref, P_ref, w_ref, b_ref,
                      damp_ref, inv2var_ref, P_out_ref, L_out_ref):
    z = z_ref[...]                      # (N, TB)
    Jt = Jt_ref[...]                    # (N, N, TB), Jt[i, j, b] = J[b, i, j]
    Jd = Jd_ref[...]                    # (N, TB)
    inv2var = inv2var_ref[0, 0]         # scalar 1/(2*var_j) from SMEM
    two_z = 2.0 * z

    # Hoisted per-symbol terms (layer-invariant):  Jd*(s_m + s_0)  and  Jd*(s_m - s_0)/(2 var_j)
    JdA = [Jd * (sv - 3.0) for sv in S_VALS]
    JdC = [Jd * (sv + 3.0) * inv2var for sv in S_VALS]

    # Symbol-indexed list of dense (N, TB) tiles.
    P = [P_ref[m] for m in range(NSYM)]

    L1 = None
    for layer in range(NUM_LAYERS):     # unrolled: 3 layers, distinct params
        w_l = w_ref[layer]              # (N, 1)  -> lane-broadcast over TB
        b_l = b_ref[layer]              # (N, 1)
        damp_l = damp_ref[layer]        # SMEM scalar

        # F.normalize(Pre_P, p=1, dim=symbol)
        denom = jnp.maximum(sum(jnp.abs(p) for p in P), 1e-12)
        inv_den = 1.0 / denom
        Pn = [p * inv_den for p in P]

        # Ps = P @ s  (scalar per (row, batch))
        Ps = sum(sv * pn for sv, pn in zip(S_VALS, Pn))              # (N, TB)

        # mean_v = J @ Ps - diag(J) * Ps  : VPU multiply + sublane reduction over j
        JPs = jnp.sum(Jt * Ps[None, :, :], axis=1)                   # (N, TB)
        t = two_z - 2.0 * (JPs - Jd * Ps)                            # 2*(z - mean_v)

        # L_m = (2(z - mean_v) - Jd*(s_m + s_0)) * (Jd*(s_m - s_0)) / (2 var_j)
        L = [(t - a) * c for a, c in zip(JdA, JdC)]
        Lmax = jnp.maximum(jnp.maximum(L[0], L[1]), jnp.maximum(L[2], L[3]))
        L1 = [l - Lmax for l in L]
        # P1 = w*exp(L1) - b ;  P = (1-damp)*P1 + damp*Pn   (.detach() is a fwd no-op)
        P = [(1.0 - damp_l) * (w_l * jnp.exp(l1) - b_l) + damp_l * pn
             for l1, pn in zip(L1, Pn)]

    for m in range(NSYM):
        P_out_ref[m] = P[m]
        L_out_ref[m] = L1[m]


def _choose_tb(B, N, vmem_budget_bytes):
    """Batch tile (lane width).  Must divide B; when blocking (TB < B) it must be
    a multiple of 128 (Mosaic last-dim block constraint)."""
    per_b = 4 * N * (N + 2 + 3 * NSYM)      # f32 bytes/elem across pipelined blocks
    per_b_temp = 4 * N * N                  # in-kernel (N,N,TB) contraction temp
    max_tb = max(1, vmem_budget_bytes // (2 * per_b + per_b_temp))
    if B <= max_tb:
        # Whole batch fits in one block; split in two grid steps when large enough
        # so v7x's two TensorCores both get work.
        if B % 256 == 0:
            return B // 2
        return B
    tb = min(max_tb, B)
    tb -= tb % 128
    while tb >= 128:
        if B % tb == 0:
            return tb
        tb -= 128
    # B too large for the budget but not splittable into 128-multiples that divide it:
    # fall back to the whole batch (correct; may exceed the soft VMEM budget).
    return B


def dnn_smpd_3(z, J, P0, var_j, w, b, damp, *, vmem_budget_bytes=16 << 20):
    """Fused 3-layer sMPD forward.  Returns (P, L) in PyTorch's (B, 2M, 4) layout.

    vmem_budget_bytes bounds the double-buffered working set per grid step; the
    default (16 MiB) is sized conservatively for v7x's 64 MiB VMEM — raise it on
    v5e/v6e (128 MiB VMEM) for larger batch tiles.
    """
    B, N, _ = J.shape
    f32 = jnp.float32

    # ---- wrapper-side layout plumbing: put batch on the lane axis ----
    z_t = jnp.transpose(z[..., 0]).astype(f32)                          # (N, B)
    Jt = jnp.transpose(J, (1, 2, 0)).astype(f32)                        # (N, N, B)
    Jd = jnp.transpose(jnp.diagonal(J, axis1=1, axis2=2)).astype(f32)   # (N, B)
    P_t = jnp.transpose(P0, (2, 1, 0)).astype(f32)                      # (NSYM, N, B)
    w = jnp.asarray(w, f32).reshape(NUM_LAYERS, N, 1)
    b = jnp.asarray(b, f32).reshape(NUM_LAYERS, N, 1)
    damp = jnp.asarray(damp, f32).reshape(NUM_LAYERS)
    inv2var = (0.5 / jnp.asarray(var_j, f32)).reshape(1, 1)

    TB = _choose_tb(B, N, vmem_budget_bytes)
    grid = (B // TB,)

    # VMEM accounting: double-buffered pipelined blocks + in-kernel (N,N,TB) temp + margin.
    per_block = 4 * TB * N * (N + 2 + 3 * NSYM)
    need = 2 * per_block + 4 * TB * N * N + (8 << 20)
    vmem_limit = int(min(max(need, 32 << 20), 128 << 20))

    spec_nb = pl.BlockSpec((N, TB), lambda bi: (0, bi))
    spec_J = pl.BlockSpec((N, N, TB), lambda bi: (0, 0, bi))
    spec_sym = pl.BlockSpec((NSYM, N, TB), lambda bi: (0, 0, bi))
    spec_wb = pl.BlockSpec((NUM_LAYERS, N, 1), lambda bi: (0, 0, 0))
    spec_smem = pl.BlockSpec(memory_space=pltpu.MemorySpace.SMEM)

    P_out, L_out = pl.pallas_call(
        _dnn_smpd3_kernel,
        grid=grid,
        in_specs=[spec_nb, spec_J, spec_nb, spec_sym, spec_wb, spec_wb,
                  spec_smem, spec_smem],
        out_specs=(spec_sym, spec_sym),
        out_shape=(jax.ShapeDtypeStruct((NSYM, N, B), f32),
                   jax.ShapeDtypeStruct((NSYM, N, B), f32)),
        compiler_params=pltpu.CompilerParams(
            dimension_semantics=("parallel",),
            vmem_limit_bytes=vmem_limit,
        ),
    )(z_t, Jt, Jd, P_t, w, b, damp, inv2var)

    # back to PyTorch's (B, N, NSYM) layout
    return jnp.transpose(P_out, (2, 1, 0)), jnp.transpose(L_out, (2, 1, 0))


def _reference(z, J, P, var_j, w, b, damp):
    """Pure-JAX transcription of the PyTorch forward for verification."""
    s = jnp.array([[-3.0], [-1.0], [1.0], [3.0]], jnp.float32)   # (4, 1)
    L1 = None
    for i in range(NUM_LAYERS):
        Pn = P / jnp.maximum(jnp.sum(jnp.abs(P), axis=2, keepdims=True), 1e-12)
        J_diag = jnp.expand_dims(jnp.diagonal(J, axis1=1, axis2=2), 2)
        Ps = Pn @ s
        mean_v = jnp.sum(J * jnp.swapaxes(Ps, 1, 2), axis=2, keepdims=True) - J_diag * Ps
        L = (2.0 * (z - mean_v) - J_diag * (s + s[0]).T) * (J_diag * (s - s[0]).T) / (2.0 * var_j)
        L1 = L - jnp.max(L, axis=2, keepdims=True)
        P1 = w[i][None] * jnp.exp(L1) - b[i][None]
        P = (1.0 - damp[i]) * P1 + damp[i] * Pn
    return P, L1


if __name__ == "__main__":
    B, M = 2, 4
    N = 2 * M

    key = jax.random.PRNGKey(0)
    k1, k2, k3 = jax.random.split(key, 3)
    z = jax.random.normal(k1, (B, N, 1), jnp.float32)
    J = jax.random.normal(k2, (B, N, N), jnp.float32)
    P0 = jax.random.uniform(k3, (B, N, NSYM), jnp.float32, minval=0.1, maxval=1.0)
    var_j = 1.0

    # Deterministic parameter init, matching sMPD_layer.__init__ (all 0.5).
    w = jnp.full((NUM_LAYERS, N, 1), 0.5, jnp.float32)
    b = jnp.full((NUM_LAYERS, N, 1), 0.5, jnp.float32)
    damp = jnp.full((NUM_LAYERS,), 0.5, jnp.float32)

    P_out, L_out = dnn_smpd_3(z, J, P0, var_j, w, b, damp)
    jax.block_until_ready((P_out, L_out))

    P_ref, L_ref = _reference(z, J, P0, var_j, w, b, damp)
    assert jnp.allclose(P_out, P_ref, atol=1e-5, rtol=1e-5), "P mismatch"
    assert jnp.allclose(L_out, L_ref, atol=1e-5, rtol=1e-5), "L mismatch"
    print("KERNEL_OK")
</pallas_src>

<mosaic_0001>
module attributes {stable_mosaic.version = 11 : i64} {
  func.func @_dnn_smpd3_kernel(%arg0: i32, %arg1: memref<8x2xf32, #tpu.memory_space<vmem>>, %arg2: memref<8x8x2xf32, #tpu.memory_space<vmem>>, %arg3: memref<8x2xf32, #tpu.memory_space<vmem>>, %arg4: memref<4x8x2xf32, #tpu.memory_space<vmem>>, %arg5: memref<3x8x1xf32, #tpu.memory_space<vmem>>, %arg6: memref<3x8x1xf32, #tpu.memory_space<vmem>>, %arg7: memref<3xf32, #tpu.memory_space<smem>>, %arg8: memref<1x1xf32, #tpu.memory_space<smem>>, %arg9: memref<4x8x2xf32, #tpu.memory_space<vmem>>, %arg10: memref<4x8x2xf32, #tpu.memory_space<vmem>>) attributes {dimension_semantics = [#tpu.dimension_semantics<parallel>], iteration_bounds = array<i64: 1>, scalar_prefetch = 0 : i64, scratch_operands = 0 : i64, tpu.core_type = #tpu.core_type<tc>, window_params = [{transform_indices = @transform_0, window_bounds = array<i64: 8, 2>}, {transform_indices = @transform_1, window_bounds = array<i64: 8, 8, 2>}, {transform_indices = @transform_2, window_bounds = array<i64: 8, 2>}, {transform_indices = @transform_3, window_bounds = array<i64: 4, 8, 2>}, {pipeline_mode = #tpu.pipeline_mode<synchronous>, transform_indices = @transform_4, window_bounds = array<i64: 3, 8, 1>}, {pipeline_mode = #tpu.pipeline_mode<synchronous>, transform_indices = @transform_5, window_bounds = array<i64: 3, 8, 1>}, {transform_indices = @transform_6, window_bounds = array<i64: 3>}, {transform_indices = @transform_7, window_bounds = array<i64: 1, 1>}, {transform_indices = @transform_8, window_bounds = array<i64: 4, 8, 2>}, {transform_indices = @transform_9, window_bounds = array<i64: 4, 8, 2>}]} {
    %c0 = arith.constant 0 : index
    %c0_0 = arith.constant 0 : index
    %0 = vector.load %arg1[%c0, %c0_0] : memref<8x2xf32, #tpu.memory_space<vmem>>, vector<8x2xf32>
    %c0_1 = arith.constant 0 : index
    %c0_2 = arith.constant 0 : index
    %c0_3 = arith.constant 0 : index
    %1 = vector.load %arg2[%c0_1, %c0_2, %c0_3] : memref<8x8x2xf32, #tpu.memory_space<vmem>>, vector<8x8x2xf32>
    %c0_4 = arith.constant 0 : index
    %c0_5 = arith.constant 0 : index
    %2 = vector.load %arg3[%c0_4, %c0_5] : memref<8x2xf32, #tpu.memory_space<vmem>>, vector<8x2xf32>
    %c0_6 = arith.constant 0 : index
    %c0_7 = arith.constant 0 : index
    %3 = memref.load %arg8[%c0_6, %c0_7] : memref<1x1xf32, #tpu.memory_space<smem>>
    %cst = arith.constant 2.000000e+00 : f32
    %4 = vector.broadcast %cst : f32 to vector<8x2xf32>
    %5 = arith.mulf %4, %0 : vector<8x2xf32>
    %cst_8 = arith.constant -6.000000e+00 : f32
    %6 = vector.broadcast %cst_8 : f32 to vector<8x2xf32>
    %7 = arith.mulf %2, %6 : vector<8x2xf32>
    %cst_9 = arith.constant -4.000000e+00 : f32
    %8 = vector.broadcast %cst_9 : f32 to vector<8x2xf32>
    %9 = arith.mulf %2, %8 : vector<8x2xf32>
    %cst_10 = arith.constant -2.000000e+00 : f32
    %10 = vector.broadcast %cst_10 : f32 to vector<8x2xf32>
    %11 = arith.mulf %2, %10 : vector<8x2xf32>
    %cst_11 = arith.constant 0.000000e+00 : f32
    %12 = vector.broadcast %cst_11 : f32 to vector<8x2xf32>
    %13 = arith.mulf %2, %12 : vector<8x2xf32>
    %cst_12 = arith.constant 0.000000e+00 : f32
    %14 = vector.broadcast %cst_12 : f32 to vector<8x2xf32>
    %15 = arith.mulf %2, %14 : vector<8x2xf32>
    %16 = vector.broadcast %3 : f32 to vector<8x2xf32>
    %17 = arith.mulf %15, %16 : vector<8x2xf32>
    %cst_13 = arith.constant 2.000000e+00 : f32
    %18 = vector.broadcast %cst_13 : f32 to vector<8x2xf32>
    %19 = arith.mulf %2, %18 : vector<8x2xf32>
    %20 = vector.broadcast %3 : f32 to vector<8x2xf32>
    %21 = arith.mulf %19, %20 : vector<8x2xf32>
    %cst_14 = arith.constant 4.000000e+00 : f32
    %22 = vector.broadcast %cst_14 : f32 to vector<8x2xf32>
    %23 = arith.mulf %2, %22 : vector<8x2xf32>
    %24 = vector.broadcast %3 : f32 to vector<8x2xf32>
    %25 = arith.mulf %23, %24 : vector<8x2xf32>
    %cst_15 = arith.constant 6.000000e+00 : f32
    %26 = vector.broadcast %cst_15 : f32 to vector<8x2xf32>
    %27 = arith.mulf %2, %26 : vector<8x2xf32>
    %28 = vector.broadcast %3 : f32 to vector<8x2xf32>
    %29 = arith.mulf %27, %28 : vector<8x2xf32>
    %c0_16 = arith.constant 0 : index
    %c0_17 = arith.constant 0 : index
    %c0_18 = arith.constant 0 : index
    %30 = vector.load %arg4[%c0_16, %c0_17, %c0_18] : memref<4x8x2xf32, #tpu.memory_space<vmem>>, vector<1x8x2xf32>
    %31 = vector.shape_cast %30 : vector<1x8x2xf32> to vector<8x2xf32>
    %c1 = arith.constant 1 : index
    %c0_19 = arith.constant 0 : index
    %c0_20 = arith.constant 0 : index
    %32 = vector.load %arg4[%c1, %c0_19, %c0_20] : memref<4x8x2xf32, #tpu.memory_space<vmem>>, vector<1x8x2xf32>
    %33 = vector.shape_cast %32 : vector<1x8x2xf32> to vector<8x2xf32>
    %c2 = arith.constant 2 : index
    %c0_21 = arith.constant 0 : index
    %c0_22 = arith.constant 0 : index
    %34 = vector.load %arg4[%c2, %c0_21, %c0_22] : memref<4x8x2xf32, #tpu.memory_space<vmem>>, vector<1x8x2xf32>
    %35 = vector.shape_cast %34 : vector<1x8x2xf32> to vector<8x2xf32>
    %c3 = arith.constant 3 : index
    %c0_23 = arith.constant 0 : index
    %c0_24 = arith.constant 0 : index
    %36 = vector.load %arg4[%c3, %c0_23, %c0_24] : memref<4x8x2xf32, #tpu.memory_space<vmem>>, vector<1x8x2xf32>
    %37 = vector.shape_cast %36 : vector<1x8x2xf32> to vector<8x2xf32>
    %c0_25 = arith.constant 0 : index
    %c0_26 = arith.constant 0 : index
    %c0_27 = arith.constant 0 : index
    %38 = vector.load %arg5[%c0_25, %c0_26, %c0_27] : memref<3x8x1xf32, #tpu.memory_space<vmem>>, vector<1x8x1xf32>
    %39 = vector.shape_cast %38 : vector<1x8x1xf32> to vector<8x1xf32>
    %c0_28 = arith.constant 0 : index
    %c0_29 = arith.constant 0 : index
    %c0_30 = arith.constant 0 : index
    %40 = vector.load %arg6[%c0_28, %c0_29, %c0_30] : memref<3x8x1xf32, #tpu.memory_space<vmem>>, vector<1x8x1xf32>
    %41 = vector.shape_cast %40 : vector<1x8x1xf32> to vector<8x1xf32>
    %c0_31 = arith.constant 0 : index
    %42 = memref.load %arg7[%c0_31] : memref<3xf32, #tpu.memory_space<smem>>
    %43 = math.absf %31 : vector<8x2xf32>
    %cst_32 = arith.constant 0.000000e+00 : f32
    %44 = vector.broadcast %cst_32 : f32 to vector<8x2xf32>
    %45 = arith.addf %44, %43 : vector<8x2xf32>
    %46 = math.absf %33 : vector<8x2xf32>
    %47 = arith.addf %45, %46 : vector<8x2xf32>
    %48 = math.absf %35 : vector<8x2xf32>
    %49 = arith.addf %47, %48 : vector<8x2xf32>
    %50 = math.absf %37 : vector<8x2xf32>
    %51 = arith.addf %49, %50 : vector<8x2xf32>
    %cst_33 = arith.constant 9.99999996E-13 : f32
    %52 = vector.broadcast %cst_33 : f32 to vector<8x2xf32>
    %53 = arith.maximumf %51, %52 : vector<8x2xf32>
    %cst_34 = arith.constant 1.000000e+00 : f32
    %54 = vector.broadcast %cst_34 : f32 to vector<8x2xf32>
    %55 = arith.divf %54, %53 : vector<8x2xf32>
    %56 = arith.mulf %31, %55 : vector<8x2xf32>
    %57 = arith.mulf %33, %55 : vector<8x2xf32>
    %58 = arith.mulf %35, %55 : vector<8x2xf32>
    %59 = arith.mulf %37, %55 : vector<8x2xf32>
    %cst_35 = arith.constant -3.000000e+00 : f32
    %60 = vector.broadcast %cst_35 : f32 to vector<8x2xf32>
    %61 = arith.mulf %60, %56 : vector<8x2xf32>
    %cst_36 = arith.constant 0.000000e+00 : f32
    %62 = vector.broadcast %cst_36 : f32 to vector<8x2xf32>
    %63 = arith.addf %62, %61 : vector<8x2xf32>
    %cst_37 = arith.constant -1.000000e+00 : f32
    %64 = vector.broadcast %cst_37 : f32 to vector<8x2xf32>
    %65 = arith.mulf %64, %57 : vector<8x2xf32>
    %66 = arith.addf %63, %65 : vector<8x2xf32>
    %cst_38 = arith.constant 1.000000e+00 : f32
    %67 = vector.broadcast %cst_38 : f32 to vector<8x2xf32>
    %68 = arith.mulf %67, %58 : vector<8x2xf32>
    %69 = arith.addf %66, %68 : vector<8x2xf32>
    %cst_39 = arith.constant 3.000000e+00 : f32
    %70 = vector.broadcast %cst_39 : f32 to vector<8x2xf32>
    %71 = arith.mulf %70, %59 : vector<8x2xf32>
    %72 = arith.addf %69, %71 : vector<8x2xf32>
    %73 = vector.shape_cast %72 : vector<8x2xf32> to vector<1x8x2xf32>
    %74 = vector.broadcast %73 : vector<1x8x2xf32> to vector<8x8x2xf32>
    %75 = arith.mulf %1, %74 : vector<8x8x2xf32>
    %cst_40 = arith.constant dense<0.000000e+00> : vector<8x2xf32>
    %76 = vector.multi_reduction <add>, %75, %cst_40 [1] : vector<8x8x2xf32> to vector<8x2xf32>
    %77 = arith.mulf %2, %72 : vector<8x2xf32>
    %78 = arith.subf %76, %77 : vector<8x2xf32>
    %cst_41 = arith.constant 2.000000e+00 : f32
    %79 = vector.broadcast %cst_41 : f32 to vector<8x2xf32>
    %80 = arith.mulf %79, %78 : vector<8x2xf32>
    %81 = arith.subf %5, %80 : vector<8x2xf32>
    %82 = arith.subf %81, %7 : vector<8x2xf32>
    %83 = arith.mulf %82, %17 : vector<8x2xf32>
    %84 = arith.subf %81, %9 : vector<8x2xf32>
    %85 = arith.mulf %84, %21 : vector<8x2xf32>
    %86 = arith.subf %81, %11 : vector<8x2xf32>
    %87 = arith.mulf %86, %25 : vector<8x2xf32>
    %88 = arith.subf %81, %13 : vector<8x2xf32>
    %89 = arith.mulf %88, %29 : vector<8x2xf32>
    %90 = arith.maximumf %83, %85 : vector<8x2xf32>
    %91 = arith.maximumf %87, %89 : vector<8x2xf32>
    %92 = arith.maximumf %90, %91 : vector<8x2xf32>
    %93 = arith.subf %83, %92 : vector<8x2xf32>
    %94 = arith.subf %85, %92 : vector<8x2xf32>
    %95 = arith.subf %87, %92 : vector<8x2xf32>
    %96 = arith.subf %89, %92 : vector<8x2xf32>
    %cst_42 = arith.constant 1.000000e+00 : f32
    %97 = arith.subf %cst_42, %42 : f32
    %98 = math.exp %93 : vector<8x2xf32>
    %99 = vector.broadcast %39 : vector<8x1xf32> to vector<8x2xf32>
    %100 = arith.mulf %99, %98 : vector<8x2xf32>
    %101 = vector.broadcast %41 : vector<8x1xf32> to vector<8x2xf32>
    %102 = arith.subf %100, %101 : vector<8x2xf32>
    %103 = vector.broadcast %97 : f32 to vector<8x2xf32>
    %104 = arith.mulf %103, %102 : vector<8x2xf32>
    %105 = vector.broadcast %42 : f32 to vector<8x2xf32>
    %106 = arith.mulf %105, %56 : vector<8x2xf32>
    %107 = arith.addf %104, %106 : vector<8x2xf32>
    %cst_43 = arith.constant 1.000000e+00 : f32
    %108 = arith.subf %cst_43, %42 : f32
    %109 = math.exp %94 : vector<8x2xf32>
    %110 = vector.broadcast %39 : vector<8x1xf32> to vector<8x2xf32>
    %111 = arith.mulf %110, %109 : vector<8x2xf32>
    %112 = vector.broadcast %41 : vector<8x1xf32> to vector<8x2xf32>
    %113 = arith.subf %111, %112 : vector<8x2xf32>
    %114 = vector.broadcast %108 : f32 to vector<8x2xf32>
    %115 = arith.mulf %114, %113 : vector<8x2xf32>
    %116 = vector.broadcast %42 : f32 to vector<8x2xf32>
    %117 = arith.mulf %116, %57 : vector<8x2xf32>
    %118 = arith.addf %115, %117 : vector<8x2xf32>
    %cst_44 = arith.constant 1.000000e+00 : f32
    %119 = arith.subf %cst_44, %42 : f32
    %120 = math.exp %95 : vector<8x2xf32>
    %121 = vector.broadcast %39 : vector<8x1xf32> to vector<8x2xf32>
    %122 = arith.mulf %121, %120 : vector<8x2xf32>
    %123 = vector.broadcast %41 : vector<8x1xf32> to vector<8x2xf32>
    %124 = arith.subf %122, %123 : vector<8x2xf32>
    %125 = vector.broadcast %119 : f32 to vector<8x2xf32>
    %126 = arith.mulf %125, %124 : vector<8x2xf32>
    %127 = vector.broadcast %42 : f32 to vector<8x2xf32>
    %128 = arith.mulf %127, %58 : vector<8x2xf32>
    %129 = arith.addf %126, %128 : vector<8x2xf32>
    %cst_45 = arith.constant 1.000000e+00 : f32
    %130 = arith.subf %cst_45, %42 : f32
    %131 = math.exp %96 : vector<8x2xf32>
    %132 = vector.broadcast %39 : vector<8x1xf32> to vector<8x2xf32>
    %133 = arith.mulf %132, %131 : vector<8x2xf32>
    %134 = vector.broadcast %41 : vector<8x1xf32> to vector<8x2xf32>
    %135 = arith.subf %133, %134 : vector<8x2xf32>
    %136 = vector.broadcast %130 : f32 to vector<8x2xf32>
    %137 = arith.mulf %136, %135 : vector<8x2xf32>
    %138 = vector.broadcast %42 : f32 to vector<8x2xf32>
    %139 = arith.mulf %138, %59 : vector<8x2xf32>
    %140 = arith.addf %137, %139 : vector<8x2xf32>
    %c1_46 = arith.constant 1 : index
    %c0_47 = arith.constant 0 : index
    %c0_48 = arith.constant 0 : index
    %141 = vector.load %arg5[%c1_46, %c0_47, %c0_48] : memref<3x8x1xf32, #tpu.memory_space<vmem>>, vector<1x8x1xf32>
    %142 = vector.shape_cast %141 : vector<1x8x1xf32> to vector<8x1xf32>
    %c1_49 = arith.constant 1 : index
    %c0_50 = arith.constant 0 : index
    %c0_51 = arith.constant 0 : index
    %143 = vector.load %arg6[%c1_49, %c0_50, %c0_51] : memref<3x8x1xf32, #tpu.memory_space<vmem>>, vector<1x8x1xf32>
    %144 = vector.shape_cast %143 : vector<1x8x1xf32> to vector<8x1xf32>
    %c1_52 = arith.constant 1 : index
    %145 = memref.load %arg7[%c1_52] : memref<3xf32, #tpu.memory_space<smem>>
    %146 = math.absf %107 : vector<8x2xf32>
    %cst_53 = arith.constant 0.000000e+00 : f32
    %147 = vector.broadcast %cst_53 : f32 to vector<8x2xf32>
    %148 = arith.addf %147, %146 : vector<8x2xf32>
    %149 = math.absf %118 : vector<8x2xf32>
    %150 = arith.addf %148, %149 : vector<8x2xf32>
    %151 = math.absf %129 : vector<8x2xf32>
    %152 = arith.addf %150, %151 : vector<8x2xf32>
    %153 = math.absf %140 : vector<8x2xf32>
    %154 = arith.addf %152, %153 : vector<8x2xf32>
    %cst_54 = arith.constant 9.99999996E-13 : f32
    %155 = vector.broadcast %cst_54 : f32 to vector<8x2xf32>
    %156 = arith.maximumf %154, %155 : vector<8x2xf32>
    %cst_55 = arith.constant 1.000000e+00 : f32
    %157 = vector.broadcast %cst_55 : f32 to vector<8x2xf32>
    %158 = arith.divf %157, %156 : vector<8x2xf32>
    %159 = arith.mulf %107, %158 : vector<8x2xf32>
    %160 = arith.mulf %118, %158 : vector<8x2xf32>
    %161 = arith.mulf %129, %158 : vector<8x2xf32>
    %162 = arith.mulf %140, %158 : vector<8x2xf32>
    %cst_56 = arith.constant -3.000000e+00 : f32
    %163 = vector.broadcast %cst_56 : f32 to vector<8x2xf32>
    %164 = arith.mulf %163, %159 : vector<8x2xf32>
    %cst_57 = arith.constant 0.000000e+00 : f32
    %165 = vector.broadcast %cst_57 : f32 to vector<8x2xf32>
    %166 = arith.addf %165, %164 : vector<8x2xf32>
    %cst_58 = arith.constant -1.000000e+00 : f32
    %167 = vector.broadcast %cst_58 : f32 to vector<8x2xf32>
    %168 = arith.mulf %167, %160 : vector<8x2xf32>
    %169 = arith.addf %166, %168 : vector<8x2xf32>
    %cst_59 = arith.constant 1.000000e+00 : f32
    %170 = vector.broadcast %cst_59 : f32 to vector<8x2xf32>
    %171 = arith.mulf %170, %161 : vector<8x2xf32>
    %172 = arith.addf %169, %171 : vector<8x2xf32>
    %cst_60 = arith.constant 3.000000e+00 : f32
    %173 = vector.broadcast %cst_60 : f32 to vector<8x2xf32>
    %174 = arith.mulf %173, %162 : vector<8x2xf32>
    %175 = arith.addf %172, %174 : vector<8x2xf32>
    %176 = vector.shape_cast %175 : vector<8x2xf32> to vector<1x8x2xf32>
    %177 = vector.broadcast %176 : vector<1x8x2xf32> to vector<8x8x2xf32>
    %178 = arith.mulf %1, %177 : vector<8x8x2xf32>
    %cst_61 = arith.constant dense<0.000000e+00> : vector<8x2xf32>
    %179 = vector.multi_reduction <add>, %178, %cst_61 [1] : vector<8x8x2xf32> to vector<8x2xf32>
    %180 = arith.mulf %2, %175 : vector<8x2xf32>
    %181 = arith.subf %179, %180 : vector<8x2xf32>
    %cst_62 = arith.constant 2.000000e+00 : f32
    %182 = vector.broadcast %cst_62 : f32 to vector<8x2xf32>
    %183 = arith.mulf %182, %181 : vector<8x2xf32>
    %184 = arith.subf %5, %183 : vector<8x2xf32>
    %185 = arith.subf %184, %7 : vector<8x2xf32>
    %186 = arith.mulf %185, %17 : vector<8x2xf32>
    %187 = arith.subf %184, %9 : vector<8x2xf32>
    %188 = arith.mulf %187, %21 : vector<8x2xf32>
    %189 = arith.subf %184, %11 : vector<8x2xf32>
    %190 = arith.mulf %189, %25 : vector<8x2xf32>
    %191 = arith.subf %184, %13 : vector<8x2xf32>
    %192 = arith.mulf %191, %29 : vector<8x2xf32>
    %193 = arith.maximumf %186, %188 : vector<8x2xf32>
    %194 = arith.maximumf %190, %192 : vector<8x2xf32>
    %195 = arith.maximumf %193, %194 : vector<8x2xf32>
    %196 = arith.subf %186, %195 : vector<8x2xf32>
    %197 = arith.subf %188, %195 : vector<8x2xf32>
    %198 = arith.subf %190, %195 : vector<8x2xf32>
    %199 = arith.subf %192, %195 : vector<8x2xf32>
    %cst_63 = arith.constant 1.000000e+00 : f32
    %200 = arith.subf %cst_63, %145 : f32
    %201 = math.exp %196 : vector<8x2xf32>
    %202 = vector.broadcast %142 : vector<8x1xf32> to vector<8x2xf32>
    %203 = arith.mulf %202, %201 : vector<8x2xf32>
    %204 = vector.broadcast %144 : vector<8x1xf32> to vector<8x2xf32>
    %205 = arith.subf %203, %204 : vector<8x2xf32>
    %206 = vector.broadcast %200 : f32 to vector<8x2xf32>
    %207 = arith.mulf %206, %205 : vector<8x2xf32>
    %208 = vector.broadcast %145 : f32 to vector<8x2xf32>
    %209 = arith.mulf %208, %159 : vector<8x2xf32>
    %210 = arith.addf %207, %209 : vector<8x2xf32>
    %cst_64 = arith.constant 1.000000e+00 : f32
    %211 = arith.subf %cst_64, %145 : f32
    %212 = math.exp %197 : vector<8x2xf32>
    %213 = vector.broadcast %142 : vector<8x1xf32> to vector<8x2xf32>
    %214 = arith.mulf %213, %212 : vector<8x2xf32>
    %215 = vector.broadcast %144 : vector<8x1xf32> to vector<8x2xf32>
    %216 = arith.subf %214, %215 : vector<8x2xf32>
    %217 = vector.broadcast %211 : f32 to vector<8x2xf32>
    %218 = arith.mulf %217, %216 : vector<8x2xf32>
    %219 = vector.broadcast %145 : f32 to vector<8x2xf32>
    %220 = arith.mulf %219, %160 : vector<8x2xf32>
    %221 = arith.addf %218, %220 : vector<8x2xf32>
    %cst_65 = arith.constant 1.000000e+00 : f32
    %222 = arith.subf %cst_65, %145 : f32
    %223 = math.exp %198 : vector<8x2xf32>
    %224 = vector.broadcast %142 : vector<8x1xf32> to vector<8x2xf32>
    %225 = arith.mulf %224, %223 : vector<8x2xf32>
    %226 = vector.broadcast %144 : vector<8x1xf32> to vector<8x2xf32>
    %227 = arith.subf %225, %226 : vector<8x2xf32>
    %228 = vector.broadcast %222 : f32 to vector<8x2xf32>
    %229 = arith.mulf %228, %227 : vector<8x2xf32>
    %230 = vector.broadcast %145 : f32 to vector<8x2xf32>
    %231 = arith.mulf %230, %161 : vector<8x2xf32>
    %232 = arith.addf %229, %231 : vector<8x2xf32>
    %cst_66 = arith.constant 1.000000e+00 : f32
    %233 = arith.subf %cst_66, %145 : f32
    %234 = math.exp %199 : vector<8x2xf32>
    %235 = vector.broadcast %142 : vector<8x1xf32> to vector<8x2xf32>
    %236 = arith.mulf %235, %234 : vector<8x2xf32>
    %237 = vector.broadcast %144 : vector<8x1xf32> to vector<8x2xf32>
    %238 = arith.subf %236, %237 : vector<8x2xf32>
    %239 = vector.broadcast %233 : f32 to vector<8x2xf32>
    %240 = arith.mulf %239, %238 : vector<8x2xf32>
    %241 = vector.broadcast %145 : f32 to vector<8x2xf32>
    %242 = arith.mulf %241, %162 : vector<8x2xf32>
    %243 = arith.addf %240, %242 : vector<8x2xf32>
    %c2_67 = arith.constant 2 : index
    %c0_68 = arith.constant 0 : index
    %c0_69 = arith.constant 0 : index
    %244 = vector.load %arg5[%c2_67, %c0_68, %c0_69] : memref<3x8x1xf32, #tpu.memory_space<vmem>>, vector<1x8x1xf32>
    %245 = vector.shape_cast %244 : vector<1x8x1xf32> to vector<8x1xf32>
    %c2_70 = arith.constant 2 : index
    %c0_71 = arith.constant 0 : index
    %c0_72 = arith.constant 0 : index
    %246 = vector.load %arg6[%c2_70, %c0_71, %c0_72] : memref<3x8x1xf32, #tpu.memory_space<vmem>>, vector<1x8x1xf32>
    %247 = vector.shape_cast %246 : vector<1x8x1xf32> to vector<8x1xf32>
    %c2_73 = arith.constant 2 : index
    %248 = memref.load %arg7[%c2_73] : memref<3xf32, #tpu.memory_space<smem>>
    %249 = math.absf %210 : vector<8x2xf32>
    %cst_74 = arith.constant 0.000000e+00 : f32
    %250 = vector.broadcast %cst_74 : f32 to vector<8x2xf32>
    %251 = arith.addf %250, %249 : vector<8x2xf32>
    %252 = math.absf %221 : vector<8x2xf32>
    %253 = arith.addf %251, %252 : vector<8x2xf32>
    %254 = math.absf %232 : vector<8x2xf32>
    %255 = arith.addf %253, %254 : vector<8x2xf32>
    %256 = math.absf %243 : vector<8x2xf32>
    %257 = arith.addf %255, %256 : vector<8x2xf32>
    %cst_75 = arith.constant 9.99999996E-13 : f32
    %258 = vector.broadcast %cst_75 : f32 to vector<8x2xf32>
    %259 = arith.maximumf %257, %258 : vector<8x2xf32>
    %cst_76 = arith.constant 1.000000e+00 : f32
    %260 = vector.broadcast %cst_76 : f32 to vector<8x2xf32>
    %261 = arith.divf %260, %259 : vector<8x2xf32>
    %262 = arith.mulf %210, %261 : vector<8x2xf32>
    %263 = arith.mulf %221, %261 : vector<8x2xf32>
    %264 = arith.mulf %232, %261 : vector<8x2xf32>
    %265 = arith.mulf %243, %261 : vector<8x2xf32>
    %cst_77 = arith.constant -3.000000e+00 : f32
    %266 = vector.broadcast %cst_77 : f32 to vector<8x2xf32>
    %267 = arith.mulf %266, %262 : vector<8x2xf32>
    %cst_78 = arith.constant 0.000000e+00 : f32
    %268 = vector.broadcast %cst_78 : f32 to vector<8x2xf32>
    %269 = arith.addf %268, %267 : vector<8x2xf32>
    %cst_79 = arith.constant -1.000000e+00 : f32
    %270 = vector.broadcast %cst_79 : f32 to vector<8x2xf32>
    %271 = arith.mulf %270, %263 : vector<8x2xf32>
    %272 = arith.addf %269, %271 : vector<8x2xf32>
    %cst_80 = arith.constant 1.000000e+00 : f32
    %273 = vector.broadcast %cst_80 : f32 to vector<8x2xf32>
    %274 = arith.mulf %273, %264 : vector<8x2xf32>
    %275 = arith.addf %272, %274 : vector<8x2xf32>
    %cst_81 = arith.constant 3.000000e+00 : f32
    %276 = vector.broadcast %cst_81 : f32 to vector<8x2xf32>
    %277 = arith.mulf %276, %265 : vector<8x2xf32>
    %278 = arith.addf %275, %277 : vector<8x2xf32>
    %279 = vector.shape_cast %278 : vector<8x2xf32> to vector<1x8x2xf32>
    %280 = vector.broadcast %279 : vector<1x8x2xf32> to vector<8x8x2xf32>
    %281 = arith.mulf %1, %280 : vector<8x8x2xf32>
    %cst_82 = arith.constant dense<0.000000e+00> : vector<8x2xf32>
    %282 = vector.multi_reduction <add>, %281, %cst_82 [1] : vector<8x8x2xf32> to vector<8x2xf32>
    %283 = arith.mulf %2, %278 : vector<8x2xf32>
    %284 = arith.subf %282, %283 : vector<8x2xf32>
    %cst_83 = arith.constant 2.000000e+00 : f32
    %285 = vector.broadcast %cst_83 : f32 to vector<8x2xf32>
    %286 = arith.mulf %285, %284 : vector<8x2xf32>
    %287 = arith.subf %5, %286 : vector<8x2xf32>
    %288 = arith.subf %287, %7 : vector<8x2xf32>
    %289 = arith.mulf %288, %17 : vector<8x2xf32>
    %290 = arith.subf %287, %9 : vector<8x2xf32>
    %291 = arith.mulf %290, %21 : vector<8x2xf32>
    %292 = arith.subf %287, %11 : vector<8x2xf32>
    %293 = arith.mulf %292, %25 : vector<8x2xf32>
    %294 = arith.subf %287, %13 : vector<8x2xf32>
    %295 = arith.mulf %294, %29 : vector<8x2xf32>
    %296 = arith.maximumf %289, %291 : vector<8x2xf32>
    %297 = arith.maximumf %293, %295 : vector<8x2xf32>
    %298 = arith.maximumf %296, %297 : vector<8x2xf32>
    %299 = arith.subf %289, %298 : vector<8x2xf32>
    %300 = arith.subf %291, %298 : vector<8x2xf32>
    %301 = arith.subf %293, %298 : vector<8x2xf32>
    %302 = arith.subf %295, %298 : vector<8x2xf32>
    %cst_84 = arith.constant 1.000000e+00 : f32
    %303 = arith.subf %cst_84, %248 : f32
    %304 = math.exp %299 : vector<8x2xf32>
    %305 = vector.broadcast %245 : vector<8x1xf32> to vector<8x2xf32>
    %306 = arith.mulf %305, %304 : vector<8x2xf32>
    %307 = vector.broadcast %247 : vector<8x1xf32> to vector<8x2xf32>
    %308 = arith.subf %306, %307 : vector<8x2xf32>
    %309 = vector.broadcast %303 : f32 to vector<8x2xf32>
    %310 = arith.mulf %309, %308 : vector<8x2xf32>
    %311 = vector.broadcast %248 : f32 to vector<8x2xf32>
    %312 = arith.mulf %311, %262 : vector<8x2xf32>
    %313 = arith.addf %310, %312 : vector<8x2xf32>
    %cst_85 = arith.constant 1.000000e+00 : f32
    %314 = arith.subf %cst_85, %248 : f32
    %315 = math.exp %300 : vector<8x2xf32>
    %316 = vector.broadcast %245 : vector<8x1xf32> to vector<8x2xf32>
    %317 = arith.mulf %316, %315 : vector<8x2xf32>
    %318 = vector.broadcast %247 : vector<8x1xf32> to vector<8x2xf32>
    %319 = arith.subf %317, %318 : vector<8x2xf32>
    %320 = vector.broadcast %314 : f32 to vector<8x2xf32>
    %321 = arith.mulf %320, %319 : vector<8x2xf32>
    %322 = vector.broadcast %248 : f32 to vector<8x2xf32>
    %323 = arith.mulf %322, %263 : vector<8x2xf32>
    %324 = arith.addf %321, %323 : vector<8x2xf32>
    %cst_86 = arith.constant 1.000000e+00 : f32
    %325 = arith.subf %cst_86, %248 : f32
    %326 = math.exp %301 : vector<8x2xf32>
    %327 = vector.broadcast %245 : vector<8x1xf32> to vector<8x2xf32>
    %328 = arith.mulf %327, %326 : vector<8x2xf32>
    %329 = vector.broadcast %247 : vector<8x1xf32> to vector<8x2xf32>
    %330 = arith.subf %328, %329 : vector<8x2xf32>
    %331 = vector.broadcast %325 : f32 to vector<8x2xf32>
    %332 = arith.mulf %331, %330 : vector<8x2xf32>
    %333 = vector.broadcast %248 : f32 to vector<8x2xf32>
    %334 = arith.mulf %333, %264 : vector<8x2xf32>
    %335 = arith.addf %332, %334 : vector<8x2xf32>
    %cst_87 = arith.constant 1.000000e+00 : f32
    %336 = arith.subf %cst_87, %248 : f32
    %337 = math.exp %302 : vector<8x2xf32>
    %338 = vector.broadcast %245 : vector<8x1xf32> to vector<8x2xf32>
    %339 = arith.mulf %338, %337 : vector<8x2xf32>
    %340 = vector.broadcast %247 : vector<8x1xf32> to vector<8x2xf32>
    %341 = arith.subf %339, %340 : vector<8x2xf32>
    %342 = vector.broadcast %336 : f32 to vector<8x2xf32>
    %343 = arith.mulf %342, %341 : vector<8x2xf32>
    %344 = vector.broadcast %248 : f32 to vector<8x2xf32>
    %345 = arith.mulf %344, %265 : vector<8x2xf32>
    %346 = arith.addf %343, %345 : vector<8x2xf32>
    %c0_88 = arith.constant 0 : index
    %c0_89 = arith.constant 0 : index
    %c0_90 = arith.constant 0 : index
    %347 = vector.load %arg9[%c0_88, %c0_89, %c0_90] : memref<4x8x2xf32, #tpu.memory_space<vmem>>, vector<1x8x2xf32>
    %348 = vector.shape_cast %347 : vector<1x8x2xf32> to vector<8x2xf32>
    %349 = vector.shape_cast %313 : vector<8x2xf32> to vector<1x8x2xf32>
    tpu.vector_store %arg9[%c0_88, %c0_89, %c0_90], %349 {strides = array<i32>} : memref<4x8x2xf32, #tpu.memory_space<vmem>>, vector<1x8x2xf32>,
    %c0_91 = arith.constant 0 : index
    %c0_92 = arith.constant 0 : index
    %c0_93 = arith.constant 0 : index
    %350 = vector.load %arg10[%c0_91, %c0_92, %c0_93] : memref<4x8x2xf32, #tpu.memory_space<vmem>>, vector<1x8x2xf32>
    %351 = vector.shape_cast %350 : vector<1x8x2xf32> to vector<8x2xf32>
    %352 = vector.shape_cast %299 : vector<8x2xf32> to vector<1x8x2xf32>
    tpu.vector_store %arg10[%c0_91, %c0_92, %c0_93], %352 {strides = array<i32>} : memref<4x8x2xf32, #tpu.memory_space<vmem>>, vector<1x8x2xf32>,
    %c1_94 = arith.constant 1 : index
    %c0_95 = arith.constant 0 : index
    %c0_96 = arith.constant 0 : index
    %353 = vector.load %arg9[%c1_94, %c0_95, %c0_96] : memref<4x8x2xf32, #tpu.memory_space<vmem>>, vector<1x8x2xf32>
    %354 = vector.shape_cast %353 : vector<1x8x2xf32> to vector<8x2xf32>
    %355 = vector.shape_cast %324 : vector<8x2xf32> to vector<1x8x2xf32>
    tpu.vector_store %arg9[%c1_94, %c0_95, %c0_96], %355 {strides = array<i32>} : memref<4x8x2xf32, #tpu.memory_space<vmem>>, vector<1x8x2xf32>,
    %c1_97 = arith.constant 1 : index
    %c0_98 = arith.constant 0 : index
    %c0_99 = arith.constant 0 : index
    %356 = vector.load %arg10[%c1_97, %c0_98, %c0_99] : memref<4x8x2xf32, #tpu.memory_space<vmem>>, vector<1x8x2xf32>
    %357 = vector.shape_cast %356 : vector<1x8x2xf32> to vector<8x2xf32>
    %358 = vector.shape_cast %300 : vector<8x2xf32> to vector<1x8x2xf32>
    tpu.vector_store %arg10[%c1_97, %c0_98, %c0_99], %358 {strides = array<i32>} : memref<4x8x2xf32, #tpu.memory_space<vmem>>, vector<1x8x2xf32>,
    %c2_100 = arith.constant 2 : index
    %c0_101 = arith.constant 0 : index
    %c0_102 = arith.constant 0 : index
    %359 = vector.load %arg9[%c2_100, %c0_101, %c0_102] : memref<4x8x2xf32, #tpu.memory_space<vmem>>, vector<1x8x2xf32>
    %360 = vector.shape_cast %359 : vector<1x8x2xf32> to vector<8x2xf32>
    %361 = vector.shape_cast %335 : vector<8x2xf32> to vector<1x8x2xf32>
    tpu.vector_store %arg9[%c2_100, %c0_101, %c0_102], %361 {strides = array<i32>} : memref<4x8x2xf32, #tpu.memory_space<vmem>>, vector<1x8x2xf32>,
    %c2_103 = arith.constant 2 : index
    %c0_104 = arith.constant 0 : index
    %c0_105 = arith.constant 0 : index
    %362 = vector.load %arg10[%c2_103, %c0_104, %c0_105] : memref<4x8x2xf32, #tpu.memory_space<vmem>>, vector<1x8x2xf32>
    %363 = vector.shape_cast %362 : vector<1x8x2xf32> to vector<8x2xf32>
    %364 = vector.shape_cast %301 : vector<8x2xf32> to vector<1x8x2xf32>
    tpu.vector_store %arg10[%c2_103, %c0_104, %c0_105], %364 {strides = array<i32>} : memref<4x8x2xf32, #tpu.memory_space<vmem>>, vector<1x8x2xf32>,
    %c3_106 = arith.constant 3 : index
    %c0_107 = arith.constant 0 : index
    %c0_108 = arith.constant 0 : index
    %365 = vector.load %arg9[%c3_106, %c0_107, %c0_108] : memref<4x8x2xf32, #tpu.memory_space<vmem>>, vector<1x8x2xf32>
    %366 = vector.shape_cast %365 : vector<1x8x2xf32> to vector<8x2xf32>
    %367 = vector.shape_cast %346 : vector<8x2xf32> to vector<1x8x2xf32>
    tpu.vector_store %arg9[%c3_106, %c0_107, %c0_108], %367 {strides = array<i32>} : memref<4x8x2xf32, #tpu.memory_space<vmem>>, vector<1x8x2xf32>,
    %c3_109 = arith.constant 3 : index
    %c0_110 = arith.constant 0 : index
    %c0_111 = arith.constant 0 : index
    %368 = vector.load %arg10[%c3_109, %c0_110, %c0_111] : memref<4x8x2xf32, #tpu.memory_space<vmem>>, vector<1x8x2xf32>
    %369 = vector.shape_cast %368 : vector<1x8x2xf32> to vector<8x2xf32>
    %370 = vector.shape_cast %302 : vector<8x2xf32> to vector<1x8x2xf32>
    tpu.vector_store %arg10[%c3_109, %c0_110, %c0_111], %370 {strides = array<i32>} : memref<4x8x2xf32, #tpu.memory_space<vmem>>, vector<1x8x2xf32>,
    return
  }
  func.func @transform_0(%arg0: i32) -> (i32, i32) {
    %c0_i32 = arith.constant 0 : i32
    %c0_i32_0 = arith.constant 0 : i32
    return %c0_i32, %arg0 : i32, i32
  }
  func.func @transform_1(%arg0: i32) -> (i32, i32, i32) {
    %c0_i32 = arith.constant 0 : i32
    %c0_i32_0 = arith.constant 0 : i32
    %c0_i32_1 = arith.constant 0 : i32
    return %c0_i32, %c0_i32_0, %arg0 : i32, i32, i32
  }
  func.func @transform_2(%arg0: i32) -> (i32, i32) {
    %c0_i32 = arith.constant 0 : i32
    %c0_i32_0 = arith.constant 0 : i32
    return %c0_i32, %arg0 : i32, i32
  }
  func.func @transform_3(%arg0: i32) -> (i32, i32, i32) {
    %c0_i32 = arith.constant 0 : i32
    %c0_i32_0 = arith.constant 0 : i32
    %c0_i32_1 = arith.constant 0 : i32
    return %c0_i32, %c0_i32_0, %arg0 : i32, i32, i32
  }
  func.func @transform_4(%arg0: i32) -> (i32, i32, i32) {
    %c0_i32 = arith.constant 0 : i32
    %c0_i32_0 = arith.constant 0 : i32
    %c0_i32_1 = arith.constant 0 : i32
    %c0_i32_2 = arith.constant 0 : i32
    return %c0_i32, %c0_i32_0, %c0_i32_1 : i32, i32, i32
  }
  func.func @transform_5(%arg0: i32) -> (i32, i32, i32) {
    %c0_i32 = arith.constant 0 : i32
    %c0_i32_0 = arith.constant 0 : i32
    %c0_i32_1 = arith.constant 0 : i32
    %c0_i32_2 = arith.constant 0 : i32
    return %c0_i32, %c0_i32_0, %c0_i32_1 : i32, i32, i32
  }
  func.func @transform_6(%arg0: i32) -> i32 {
    %c0_i32 = arith.constant 0 : i32
    %c0_i32_0 = arith.constant 0 : i32
    return %c0_i32 : i32
  }
  func.func @transform_7(%arg0: i32) -> (i32, i32) {
    %c0_i32 = arith.constant 0 : i32
    %c0_i32_0 = arith.constant 0 : i32
    %c0_i32_1 = arith.constant 0 : i32
    return %c0_i32, %c0_i32_0 : i32, i32
  }
  func.func @transform_8(%arg0: i32) -> (i32, i32, i32) {
    %c0_i32 = arith.constant 0 : i32
    %c0_i32_0 = arith.constant 0 : i32
    %c0_i32_1 = arith.constant 0 : i32
    return %c0_i32, %c0_i32_0, %arg0 : i32, i32, i32
  }
  func.func @transform_9(%arg0: i32) -> (i32, i32, i32) {
    %c0_i32 = arith.constant 0 : i32
    %c0_i32_0 = arith.constant 0 : i32
    %c0_i32_1 = arith.constant 0 : i32
    return %c0_i32, %c0_i32_0, %arg0 : i32, i32, i32
  }
}

</mosaic_0001>

<bundles_post_ra>
// kernel: tpu_custom_call.1
= control target key start
LH: loop header
LB: loop body
LE: loop exit
PB: predicated region body
PF: predicated region fallthrough
CT: control target
= control target key end

     0   :  { %16 = vsyncpa [#allocation4], 0  ;;  %s1131_s0 = inlined_call_operand.vmem [shape: f32[8,2], index: 0, kind: input, shape index: {}]   ;;  %s1132_s1 = inlined_call_operand.vmem [shape: f32[8,8,2], index: 1, kind: input, shape index: {}]   ;;  %s1133_s2 = inlined_call_operand.vmem [shape: f32[8,2], index: 2, kind: input, shape index: {}]   ;;  %s1134_s3 = inlined_call_operand.vmem [shape: f32[4,8,2], index: 3, kind: input, shape index: {}]   ;;  %s1135_s4 = inlined_call_operand.vmem [shape: f32[3,8,1], index: 4, kind: input, shape index: {}]   ;;  %s1136_s5 = inlined_call_operand.vmem [shape: f32[3,8,1], index: 5, kind: input, shape index: {}]   ;;  %s1137_s6 = inlined_call_operand.vmem [shape: f32[3], index: 6, kind: input, shape index: {}]   ;;  %s1138_s7 = inlined_call_operand.<no memory space> [shape: f32[1,1], index: 7, kind: input, shape index: {}]   ;;  %s1139_s8 = inlined_call_operand.vmem [shape: f32[4,8,2], index: 8, kind: output, shape index: {0}]   ;;  %s1140_s9 = inlined_call_operand.vmem [shape: f32[4,8,2], index: 9, kind: output, shape index: {1}]  }
   0x1   :  { %s35_s11 = sshll.u32 %s1137_s6, 4  ;;  %s36_s11 = int_to_ptr.vmem [resolvable:$true] %s35_s11 }
   0x2   :  { %s766_s12 = scalar_lea.vmem %s36_s11, 16  ;;  %p771_p1 = scmp.lt.s32.totalorder %s36_s11, %s36_s11 }
   0x3   :  { %p767_p0 = scmp.ne.s32.totalorder %s36_s11, %s766_s12  ;;  %p772_p2 = scmp.lt.s32.totalorder %s766_s12, %s766_s12 }
   0x5   :  { %p773_p3 = por %p772_p2, %p771_p1 }
   0x7   :  { %p774_p4 = pnand %p773_p3, %p767_p0 }
   0x9   :  { %777 = shalt.err (!%p774_p4)
}
   0xa   :  { %s780_s13 = smov [#allocation3]  }
   0xb   :  { %38 = dma.vmem_to_smem %s36_s11, 16, %s780_s13, [#allocation4]  }
   0xc   :  { %778 = dma.done.wait [#allocation4], 16  }
   0xd   :  { %779 = vsyncadd [#allocation4], 4294967280 }
   0xe   :  { %44 = sfence }
   0xf   :  { %v76_v0 = vld [vmem:[%s1135_s4] sm:$0xff]  ;;  %v781_v1 = vmov 0   ;;  %v720_v2 = vld [vmem:[%s1135_s4 + $0x8] sm:$0xff]  ;;  %v718_v7 = vld [vmem:[%s1134_s3 + $0x10] sm:$0xff]  ;;  %vm109_vm0 = vcmask 15360   ;;  %vm208_vm1 = vcmask 1041409  }
  0x10   :  { %734 = vset.pattern.permute.xlu0 %v781_v1  ;;  %735 = vset.pattern.permute.xlu1 %v781_v1  ;;  %v77_v3 = vld [vmem:[%s1136_s5] sm:$0xff]  ;;  %v721_v4 = vld [vmem:[%s1136_s5 + $0x8] sm:$0xff]  ;;  %v723_v8 = vld [vmem:[%s1135_s4 + $0x10] sm:$0xff]  ;;  %v83_v13 = vand.u32 2147483647, %v718_v7  ;;  %vm211_vm2 = vcmask 1042434  }
  0x11   :  { %250 = vperm.xlu0 %734, %v76_v0   ;;  %454 = vperm.xlu1 %735, %v720_v2   ;;  %v69_v5 = vld [vmem:[%s1134_s3] sm:$0xff]  ;;  %v717_v6 = vld [vmem:[%s1134_s3 + $0x8] sm:$0xff]  ;;  %v724_v9 = vld [vmem:[%s1136_s5 + $0x10] sm:$0xff]  ;;  %vm214_vm3 = vcmask 1043459   ;;  %vm217_vm4 = vcmask 1044484   ;;  %vm220_vm5 = vcmask 1045509  }
  0x12   :  { %v719_v10 = vld [vmem:[%s1134_s3 + $0x18] sm:$0xff]  ;;  %v79_v11 = vand.u32 2147483647, %v69_v5  ;;  %v81_v12 = vand.u32 2147483647, %v717_v6  ;;  %v879_v28 = vld [vmem:[%s1132_s1] sm:$0xff] }
  0x13   :  { %v85_v15 = vand.u32 2147483647, %v719_v10  ;;  %v884_v29 = vld [vmem:[%s1132_s1 + $0x8] sm:$0xff]  ;;  %v890_v31 = vld [vmem:[%s1132_s1 + $0x10] sm:$0xff]  ;;  %v895_v32 = vld [vmem:[%s1132_s1 + $0x18] sm:$0xff]  ;;  %vm223_vm6 = vcmask 1046534  }
  0x14   :  { %v82_v14 = vadd.f32 %v81_v12, %v79_v11  ;;  %v900_v33 = vld [vmem:[%s1132_s1 + $0x20] sm:$0xff]  ;;  %v905_v34 = vld [vmem:[%s1132_s1 + $0x28] sm:$0xff]  ;;  %v910_v35 = vld [vmem:[%s1132_s1 + $0x30] sm:$0xff]  ;;  %vm226_vm7 = vcmask 1047559   ;;  %s722_s28 = sld [smem:[#allocation3 + $0x1]]  ;;  %s725_s14 = sld [smem:[#allocation3 + $0x2]] }
  0x15   :  { %256 = vperm.xlu0 %734, %v77_v3   ;;  %460 = vperm.xlu1 %735, %v721_v4   ;;  %v915_v36 = vld [vmem:[%s1132_s1 + $0x38] sm:$0xff] }
  0x16   :  { %v84_v16 = vadd.f32 %v83_v13, %v82_v14 }
  0x18   :  { %v86_v17 = vadd.f32 %v85_v15, %v84_v16  ;;  %v936_v16 = vld [vmem:[%s1133_s2] sm:$0xff] }
  0x19   :  { %658 = vperm.xlu0 %734, %v723_v8   ;;  %664 = vperm.xlu1 %735, %v724_v9  }
  0x1a   :  { %v87_v18 = vmax.f32 %v86_v17, 1e-12  ;;  %s449_s29 = ssub.f32 1.0, %s722_s28 }
  0x1b   :  { %s653_s15 = ssub.f32 1.0, %s725_s14 }
  0x1c   :  { %736 = vrcp.f32 %v87_v18 }
  0x26   :  { %v737_v19 = vpop.eup %736 }
  0x27   :  { %v865_v20 = vmul.f32 %v737_v19, %v69_v5  ;;  %v867_v21 = vmul.f32 %v737_v19, %v717_v6  ;;  %v869_v22 = vmul.f32 %v737_v19, %v719_v10  ;;  %v871_v23 = vmul.f32 %v737_v19, %v718_v7 }
  0x29   :  { %v94_v24 = vmul.f32 -3.0, %v865_v20  ;;  %v96_v25 = vmul.f32 -1.0, %v867_v21  ;;  %v99_v27 = vmul.f32 3.0, %v869_v22 }
  0x2b   :  { %v97_v26 = vadd.f32 %v96_v25, %v94_v24 }
  0x2d   :  { %v98_v30 = vadd.f32 %v97_v26, %v871_v23 }
  0x2f   :  { %v100_v37 = vadd.f32 %v99_v27, %v98_v30 }
  0x31   :  { %v101_v38 = vmul.f32 %v100_v37, %v879_v28  ;;  %v102_v39 = vmul.f32 %v100_v37, %v884_v29  ;;  %v103_v40 = vmul.f32 %v100_v37, %v890_v31  ;;  %v104_v41 = vmul.f32 %v100_v37, %v895_v32 }
  0x32   :  { %v105_v42 = vmul.f32 %v100_v37, %v900_v33  ;;  %v106_v43 = vmul.f32 %v100_v37, %v905_v34  ;;  %v107_v44 = vmul.f32 %v100_v37, %v910_v35  ;;  %v108_v45 = vmul.f32 %v100_v37, %v915_v36 }
  0x33   :  { %v110_v46 = vsel %vm109_vm0, %v101_v38, 0.0  ;;  %v117_v47 = vsel %vm109_vm0, %v102_v39, 0.0  ;;  %v124_v48 = vsel %vm109_vm0, %v103_v40, 0.0  ;;  %v131_v49 = vsel %vm109_vm0, %v104_v41, 0.0 }
  0x34   :  { %v111_v50 = vrot.slane %v110_v46, 4  ;;  %v118_v51 = vrot.slane %v117_v47, 4  ;;  %v125_v52 = vrot.slane %v124_v48, 4  ;;  %v132_v53 = vrot.slane %v131_v49, 4 }
  0x35   :  { %v138_v54 = vsel %vm109_vm0, %v105_v42, 0.0  ;;  %v145_v55 = vsel %vm109_vm0, %v106_v43, 0.0  ;;  %v152_v56 = vsel %vm109_vm0, %v107_v44, 0.0  ;;  %v159_v0 = vsel %vm109_vm0, %v108_v45, 0.0 }
  0x36   :  { %v112_v57 = vadd.f32 %v111_v50, %v110_v46  ;;  %v119_v58 = vadd.f32 %v118_v51, %v117_v47  ;;  %v126_v59 = vadd.f32 %v125_v52, %v124_v48  ;;  %v133_v60 = vadd.f32 %v132_v53, %v131_v49 }
  0x37   :  { %v139_v61 = vrot.slane %v138_v54, 4  ;;  %v146_v62 = vrot.slane %v145_v55, 4  ;;  %v153_v63 = vrot.slane %v152_v56, 4  ;;  %v160_v12 = vrot.slane %v159_v0, 4 }
  0x38   :  { %v113_v1 = vrot.slane %v112_v57, 2  ;;  %v120_v2 = vrot.slane %v119_v58, 2  ;;  %v127_v3 = vrot.slane %v126_v59, 2  ;;  %v134_v4 = vrot.slane %v133_v60, 2 }
  0x39   :  { %v140_v5 = vadd.f32 %v139_v61, %v138_v54  ;;  %v147_v6 = vadd.f32 %v146_v62, %v145_v55  ;;  %v154_v15 = vadd.f32 %v153_v63, %v152_v56  ;;  %v161_v25 = vadd.f32 %v160_v12, %v159_v0 }
  0x3a   :  { %v114_v7 = vadd.f32 %v113_v1, %v112_v57  ;;  %v121_v8 = vadd.f32 %v120_v2, %v119_v58  ;;  %v128_v9 = vadd.f32 %v127_v3, %v126_v59  ;;  %v135_v10 = vadd.f32 %v134_v4, %v133_v60 }
  0x3b   :  { %v141_v11 = vrot.slane %v140_v5, 2  ;;  %v148_v18 = vrot.slane %v147_v6, 2  ;;  %v155_v30 = vrot.slane %v154_v15, 2  ;;  %v166_v38 = vmul.f32 %v100_v37, %v936_v16 }
  0x3c   :  { %v122_v13 = vrot.slane %v121_v8, 1  ;;  %v129_v14 = vrot.slane %v128_v9, 1  ;;  %v115_v17 = vrot.slane %v114_v7, 1  ;;  %v136_v24 = vrot.slane %v135_v10, 1 }
  0x3d   :  { %v142_v19 = vadd.f32 %v141_v11, %v140_v5  ;;  %v149_v40 = vadd.f32 %v148_v18, %v147_v6  ;;  %v168_v42 = vrot.slane %v166_v38, 1  ;;  %v169_v43 = vrot.slane %v166_v38, 2 }
  0x3e   :  { %v123_v26 = vadd.f32 %v122_v13, %v121_v8  ;;  %v130_v27 = vadd.f32 %v129_v14, %v128_v9  ;;  %v116_v39 = vadd.f32 %v115_v17, %v114_v7  ;;  %v137_v44 = vadd.f32 %v136_v24, %v135_v10 }
  0x3f   :  { %v143_v41 = vrot.slane %v142_v19, 1  ;;  %v162_v45 = vrot.slane %v161_v25, 2  ;;  %v170_v46 = vrot.slane %v166_v38, 3  ;;  %v156_v47 = vadd.f32 %v155_v30, %v154_v15 }
  0x40   :  { %v184_v48 = vsub.f32 %v123_v26, %v168_v42  ;;  %v185_v49 = vsub.f32 %v130_v27, %v169_v43  ;;  %v150_v50 = vrot.slane %v149_v40, 1  ;;  %v183_v51 = vsub.f32 %v116_v39, %v166_v38  ;;  %v45_v27 = vld [vmem:[%s1131_s0] sm:$0xff]  ;;  %s78_s0 = sld [smem:[#allocation3]] }
  0x41   :  { %v144_v52 = vadd.f32 %v143_v41, %v142_v19  ;;  %v171_v53 = vrot.slane %v166_v38, 4  ;;  %v163_v55 = vadd.f32 %v162_v45, %v161_v25  ;;  %v186_v56 = vsub.f32 %v137_v44, %v170_v46 }
  0x42   :  { %v192_v54 = vmul.f32 2.0, %v184_v48  ;;  %v157_v57 = vrot.slane %v156_v47, 1  ;;  %v193_v37 = vmul.f32 2.0, %v185_v49  ;;  %v151_v58 = vadd.f32 %v150_v50, %v149_v40 }
  0x43   :  { %v172_v59 = vrot.slane %v166_v38, 5  ;;  %v191_v60 = vmul.f32 2.0, %v183_v51  ;;  %v187_v62 = vsub.f32 %v144_v52, %v171_v53  ;;  %v164_v63 = vrot.slane %v163_v55, 1 }
  0x44   :  { %v207_v61 = vrot.slane %v192_v54, 7  ;;  %v194_v0 = vmul.f32 2.0, %v186_v56  ;;  %v158_v1 = vadd.f32 %v157_v57, %v156_v47  ;;  %v173_v2 = vrot.slane %v166_v38, 6 }
  0x45   :  { %v210_v3 = vrot.slane %v193_v37, 6  ;;  %v188_v4 = vsub.f32 %v151_v58, %v172_v59  ;;  %v195_v6 = vmul.f32 2.0, %v187_v62  ;;  %v165_v7 = vadd.f32 %v164_v63, %v163_v55 }
  0x46   :  { %v209_v5 = vsel %vm208_vm1, %v207_v61, %v191_v60  ;;  %v174_v8 = vrot.slane %v166_v38, 7  ;;  %v213_v9 = vrot.slane %v194_v0, 5  ;;  %v189_v10 = vsub.f32 %v158_v1, %v173_v2 }
  0x47   :  { %v212_v11 = vsel %vm211_vm2, %v210_v3, %v209_v5  ;;  %v196_v12 = vmul.f32 2.0, %v188_v4  ;;  %v216_v13 = vrot.slane %v195_v6, 4  ;;  %v948_v39 = vmul.f32 2.0, %v45_v27 }
  0x48   :  { %v190_v14 = vsub.f32 %v165_v7, %v174_v8  ;;  %v215_v15 = vsel %vm214_vm3, %v213_v9, %v212_v11  ;;  %v197_v17 = vmul.f32 2.0, %v189_v10  ;;  %v61_v41 = vstv %s1138_s7  ;;  %s245_s7 = ssub.f32 1.0, %s78_s0 }
  0x49   :  { %v219_v18 = vrot.slane %v196_v12, 3  ;;  %v218_v19 = vsel %vm217_vm4, %v216_v13, %v215_v15  ;;  %v955_v42 = vmul.f32 0.0, %v936_v16  ;;  %v63_v43 = vmul.f32 2.0, %v936_v16 }
  0x4a   :  { %v198_v24 = vmul.f32 2.0, %v190_v14  ;;  %v222_v25 = vrot.slane %v197_v17, 2  ;;  %v65_v44 = vmul.f32 4.0, %v936_v16  ;;  %v67_v45 = vmul.f32 6.0, %v936_v16 }
  0x4b   :  { %v221_v26 = vsel %vm220_vm5, %v219_v18, %v218_v19  ;;  %v961_v46 = vmul.f32 -6.0, %v936_v16  ;;  %v964_v47 = vmul.f32 -4.0, %v936_v16  ;;  %v967_v48 = vmul.f32 -2.0, %v936_v16 }
  0x4c   :  { %v225_v30 = vrot.slane %v198_v24, 1  ;;  %v224_v38 = vsel %vm223_vm6, %v222_v25, %v221_v26  ;;  %v971_v50 = vmul.f32 %v61_v41, %v955_v42  ;;  %v973_v51 = vmul.f32 %v63_v43, %v61_v41 }
  0x4d   :  { %v975_v52 = vmul.f32 %v65_v44, %v61_v41  ;;  %v977_v53 = vmul.f32 %v67_v45, %v61_v41  ;;  %v262_v13 = vstv %s78_s0  ;;  %v260_v19 = vstv %s245_s7 }
  0x4e   :  { %v227_v40 = vsel %vm226_vm7, %v225_v30, %v224_v38  ;;  %v263_v25 = vmul.f32 %v262_v13, %v865_v20  ;;  %v270_v26 = vmul.f32 %v262_v13, %v867_v21  ;;  %v277_v27 = vmul.f32 %v262_v13, %v871_v23 }
  0x4f   :  { %v229_v49 = vsub.f32 %v948_v39, %v227_v40  ;;  %v284_v43 = vmul.f32 %v262_v13, %v869_v22 }
  0x51   :  { %v230_v54 = vsub.f32 %v229_v49, %v961_v46  ;;  %v232_v55 = vsub.f32 %v229_v49, %v964_v47  ;;  %v234_v56 = vsub.f32 %v229_v49, %v967_v48  ;;  %v236_v57 = vsub.f32 %v229_v49, %v955_v42 }
  0x53   :  { %v231_v37 = vmul.f32 %v230_v54, %v971_v50  ;;  %v233_v58 = vmul.f32 %v232_v55, %v973_v51  ;;  %v235_v59 = vmul.f32 %v234_v56, %v975_v52  ;;  %v237_v60 = vmul.f32 %v236_v57, %v977_v53 }
  0x55   :  { %v238_v61 = vmax.f32 %v231_v37, %v233_v58  ;;  %v239_v62 = vmax.f32 %v235_v59, %v237_v60 }
  0x57   :  { %v240_v63 = vmax.f32 %v238_v61, %v239_v62 }
  0x59   :  { %v241_v0 = vsub.f32 %v231_v37, %v240_v63  ;;  %v242_v1 = vsub.f32 %v233_v58, %v240_v63  ;;  %v243_v2 = vsub.f32 %v235_v59, %v240_v63  ;;  %v244_v3 = vsub.f32 %v237_v60, %v240_v63 }
  0x5b   :  { %v246_v4 = vmul.f32 1.442695, %v241_v0  ;;  %v265_v5 = vmul.f32 1.442695, %v242_v1  ;;  %v272_v6 = vmul.f32 1.442695, %v243_v2 }
  0x5c   :  { %v279_v7 = vmul.f32 1.442695, %v244_v3 }
  0x5d   :  { %738 = vpow2.f32 %v246_v4 }
  0x5e   :  { %740 = vpow2.f32 %v265_v5 }
  0x5f   :  { %742 = vpow2.f32 %v272_v6 }
  0x60   :  { %744 = vpow2.f32 %v279_v7 }
  0x67   :  { %v739_v8 = vpop.eup %738 }
  0x68   :  { %v741_v9 = vpop.eup %740 }
  0x69   :  { %v743_v10 = vpop.eup %742 }
  0x6a   :  { %v745_v11 = vpop.eup %744 }
  0x90   :  { %v251_v12 = vpop.permute.xlu0 %250 }
  0x91   :  { %v253_v14 = vmul.f32 %v739_v8, %v251_v12  ;;  %v267_v15 = vmul.f32 %v741_v9, %v251_v12  ;;  %v274_v17 = vmul.f32 %v743_v10, %v251_v12  ;;  %v281_v18 = vmul.f32 %v745_v11, %v251_v12 }
  0x94   :  { %v257_v24 = vpop.permute.xlu0 %256 }
  0x95   :  { %v259_v30 = vsub.f32 %v253_v14, %v257_v24  ;;  %v268_v38 = vsub.f32 %v267_v15, %v257_v24  ;;  %v275_v40 = vsub.f32 %v274_v17, %v257_v24  ;;  %v282_v41 = vsub.f32 %v281_v18, %v257_v24 }
  0x97   :  { %v261_v44 = vmul.f32 %v260_v19, %v259_v30  ;;  %v269_v45 = vmul.f32 %v268_v38, %v260_v19  ;;  %v276_v49 = vmul.f32 %v275_v40, %v260_v19  ;;  %v283_v54 = vmul.f32 %v282_v41, %v260_v19 }
  0x99   :  { %v264_v55 = vadd.f32 %v263_v25, %v261_v44  ;;  %v271_v56 = vadd.f32 %v270_v26, %v269_v45  ;;  %v278_v57 = vadd.f32 %v277_v27, %v276_v49  ;;  %v285_v37 = vadd.f32 %v284_v43, %v283_v54 }
  0x9b   :  { %v291_v58 = vand.u32 2147483647, %v264_v55  ;;  %v293_v20 = vand.u32 2147483647, %v271_v56  ;;  %v295_v21 = vand.u32 2147483647, %v278_v57 }
  0x9c   :  { %v297_v23 = vand.u32 2147483647, %v285_v37 }
  0x9d   :  { %v294_v59 = vadd.f32 %v293_v20, %v291_v58 }
  0x9f   :  { %v296_v60 = vadd.f32 %v295_v21, %v294_v59 }
  0xa1   :  { %v298_v61 = vadd.f32 %v297_v23, %v296_v60 }
  0xa3   :  { %v299_v62 = vmax.f32 %v298_v61, 1e-12 }
  0xa5   :  { %746 = vrcp.f32 %v299_v62 }
  0xaf   :  { %v747_v63 = vpop.eup %746 }
  0xb0   :  { %v991_v0 = vmul.f32 %v747_v63, %v264_v55  ;;  %v993_v22 = vmul.f32 %v747_v63, %v271_v56  ;;  %v995_v1 = vmul.f32 %v747_v63, %v278_v57  ;;  %v997_v2 = vmul.f32 %v747_v63, %v285_v37 }
  0xb2   :  { %v306_v3 = vmul.f32 -3.0, %v991_v0  ;;  %v308_v4 = vmul.f32 -1.0, %v993_v22  ;;  %v311_v7 = vmul.f32 3.0, %v997_v2 }
  0xb4   :  { %v309_v5 = vadd.f32 %v308_v4, %v306_v3 }
  0xb6   :  { %v310_v6 = vadd.f32 %v309_v5, %v995_v1 }
  0xb8   :  { %v312_v8 = vadd.f32 %v311_v7, %v310_v6 }
  0xba   :  { %v313_v9 = vmul.f32 %v312_v8, %v879_v28  ;;  %v314_v10 = vmul.f32 %v312_v8, %v884_v29  ;;  %v315_v11 = vmul.f32 %v312_v8, %v890_v31  ;;  %v1007_v12 = vmul.f32 %v312_v8, %v936_v16 }
  0xbb   :  { %v316_v13 = vmul.f32 %v312_v8, %v895_v32  ;;  %v317_v14 = vmul.f32 %v312_v8, %v900_v33  ;;  %v318_v15 = vmul.f32 %v312_v8, %v905_v34  ;;  %v319_v17 = vmul.f32 %v312_v8, %v910_v35 }
  0xbc   :  { %v320_v18 = vmul.f32 %v312_v8, %v915_v36  ;;  %v321_v19 = vsel %vm109_vm0, %v313_v9, 0.0  ;;  %v328_v24 = vsel %vm109_vm0, %v314_v10, 0.0  ;;  %v335_v25 = vsel %vm109_vm0, %v315_v11, 0.0 }
  0xbd   :  { %v322_v26 = vrot.slane %v321_v19, 4  ;;  %v329_v27 = vrot.slane %v328_v24, 4  ;;  %v336_v30 = vrot.slane %v335_v25, 4  ;;  %v342_v38 = vsel %vm109_vm0, %v316_v13, 0.0 }
  0xbe   :  { %v343_v40 = vrot.slane %v342_v38, 4  ;;  %v349_v41 = vsel %vm109_vm0, %v317_v14, 0.0  ;;  %v356_v43 = vsel %vm109_vm0, %v318_v15, 0.0  ;;  %v363_v44 = vsel %vm109_vm0, %v319_v17, 0.0 }
  0xbf   :  { %v323_v45 = vadd.f32 %v322_v26, %v321_v19  ;;  %v330_v49 = vadd.f32 %v329_v27, %v328_v24  ;;  %v337_v54 = vadd.f32 %v336_v30, %v335_v25  ;;  %v350_v55 = vrot.slane %v349_v41, 4 }
  0xc0   :  { %v344_v56 = vadd.f32 %v343_v40, %v342_v38  ;;  %v357_v57 = vrot.slane %v356_v43, 4  ;;  %v364_v37 = vrot.slane %v363_v44, 4  ;;  %v370_v58 = vsel %vm109_vm0, %v320_v18, 0.0 }
  0xc1   :  { %v324_v20 = vrot.slane %v323_v45, 2  ;;  %v331_v59 = vrot.slane %v330_v49, 2  ;;  %v338_v21 = vrot.slane %v337_v54, 2  ;;  %v351_v60 = vadd.f32 %v350_v55, %v349_v41 }
  0xc2   :  { %v345_v23 = vrot.slane %v344_v56, 2  ;;  %v358_v61 = vadd.f32 %v357_v57, %v356_v43  ;;  %v365_v62 = vadd.f32 %v364_v37, %v363_v44  ;;  %v371_v63 = vrot.slane %v370_v58, 4 }
  0xc3   :  { %v325_v3 = vadd.f32 %v324_v20, %v323_v45  ;;  %v332_v4 = vadd.f32 %v331_v59, %v330_v49  ;;  %v339_v5 = vadd.f32 %v338_v21, %v337_v54  ;;  %v352_v6 = vrot.slane %v351_v60, 2 }
  0xc4   :  { %v346_v7 = vadd.f32 %v345_v23, %v344_v56  ;;  %v359_v8 = vrot.slane %v358_v61, 2  ;;  %v366_v9 = vrot.slane %v365_v62, 2  ;;  %v372_v10 = vadd.f32 %v371_v63, %v370_v58 }
  0xc5   :  { %v326_v11 = vrot.slane %v325_v3, 1  ;;  %v333_v13 = vrot.slane %v332_v4, 1  ;;  %v340_v14 = vrot.slane %v339_v5, 1  ;;  %v353_v15 = vadd.f32 %v352_v6, %v351_v60 }
  0xc6   :  { %v347_v17 = vrot.slane %v346_v7, 1  ;;  %v360_v18 = vadd.f32 %v359_v8, %v358_v61  ;;  %v367_v19 = vadd.f32 %v366_v9, %v365_v62  ;;  %v373_v24 = vrot.slane %v372_v10, 2 }
  0xc7   :  { %v327_v25 = vadd.f32 %v326_v11, %v325_v3  ;;  %v334_v26 = vadd.f32 %v333_v13, %v332_v4  ;;  %v341_v27 = vadd.f32 %v340_v14, %v339_v5  ;;  %v354_v30 = vrot.slane %v353_v15, 1 }
  0xc8   :  { %v348_v38 = vadd.f32 %v347_v17, %v346_v7  ;;  %v361_v40 = vrot.slane %v360_v18, 1  ;;  %v368_v41 = vrot.slane %v367_v19, 1  ;;  %v374_v43 = vadd.f32 %v373_v24, %v372_v10 }
  0xc9   :  { %v355_v44 = vadd.f32 %v354_v30, %v353_v15  ;;  %v379_v45 = vrot.slane %v1007_v12, 1  ;;  %v380_v49 = vrot.slane %v1007_v12, 2  ;;  %v381_v54 = vrot.slane %v1007_v12, 3 }
  0xca   :  { %v362_v55 = vadd.f32 %v361_v40, %v360_v18  ;;  %v369_v56 = vadd.f32 %v368_v41, %v367_v19  ;;  %v375_v57 = vrot.slane %v374_v43, 1  ;;  %v382_v37 = vrot.slane %v1007_v12, 4 }
  0xcb   :  { %v383_v58 = vrot.slane %v1007_v12, 5  ;;  %v384_v20 = vrot.slane %v1007_v12, 6  ;;  %v385_v59 = vrot.slane %v1007_v12, 7  ;;  %v394_v21 = vsub.f32 %v327_v25, %v1007_v12 }
  0xcc   :  { %v376_v60 = vadd.f32 %v375_v57, %v374_v43  ;;  %v395_v23 = vsub.f32 %v334_v26, %v379_v45  ;;  %v396_v61 = vsub.f32 %v341_v27, %v380_v49  ;;  %v397_v62 = vsub.f32 %v348_v38, %v381_v54 }
  0xcd   :  { %v398_v63 = vsub.f32 %v355_v44, %v382_v37  ;;  %v399_v3 = vsub.f32 %v362_v55, %v383_v58  ;;  %v400_v4 = vsub.f32 %v369_v56, %v384_v20  ;;  %v402_v10 = vmul.f32 2.0, %v394_v21 }
  0xce   :  { %v401_v5 = vsub.f32 %v376_v60, %v385_v59  ;;  %v403_v6 = vmul.f32 2.0, %v395_v23  ;;  %v404_v7 = vmul.f32 2.0, %v396_v61  ;;  %v405_v8 = vmul.f32 2.0, %v397_v62 }
  0xcf   :  { %v406_v9 = vmul.f32 2.0, %v398_v63  ;;  %v407_v11 = vmul.f32 2.0, %v399_v3  ;;  %v408_v15 = vmul.f32 2.0, %v400_v4 }
  0xd0   :  { %v418_v13 = vrot.slane %v403_v6, 7  ;;  %v420_v14 = vrot.slane %v404_v7, 6  ;;  %v409_v17 = vmul.f32 2.0, %v401_v5  ;;  %v422_v18 = vrot.slane %v405_v8, 5  ;;  %v455_v6 = vpop.permute.xlu1 %454 }
  0xd1   :  { %v424_v24 = vrot.slane %v406_v9, 4  ;;  %v426_v26 = vrot.slane %v407_v11, 3  ;;  %v428_v30 = vrot.slane %v408_v15, 2 }
  0xd2   :  { %v419_v12 = vsel %vm208_vm1, %v418_v13, %v402_v10  ;;  %v430_v40 = vrot.slane %v409_v17, 1  ;;  %v464_v13 = vstv %s449_s29 }
  0xd3   :  { %v421_v19 = vsel %vm211_vm2, %v420_v14, %v419_v12  ;;  %v466_v14 = vstv %s722_s28 }
  0xd4   :  { %v423_v25 = vsel %vm214_vm3, %v422_v18, %v421_v19  ;;  %v461_v15 = vpop.permute.xlu1 %460 }
  0xd5   :  { %v425_v27 = vsel %vm217_vm4, %v424_v24, %v423_v25 }
  0xd6   :  { %v427_v38 = vsel %vm220_vm5, %v426_v26, %v425_v27  ;;  %v467_v26 = vmul.f32 %v466_v14, %v991_v0 }
  0xd7   :  { %v429_v41 = vsel %vm223_vm6, %v428_v30, %v427_v38  ;;  %v474_v38 = vmul.f32 %v466_v14, %v993_v22 }
  0xd8   :  { %v431_v43 = vsel %vm226_vm7, %v430_v40, %v429_v41 }
  0xd9   :  { %v433_v44 = vsub.f32 %v948_v39, %v431_v43 }
  0xdb   :  { %v434_v45 = vsub.f32 %v433_v44, %v961_v46  ;;  %v436_v49 = vsub.f32 %v433_v44, %v964_v47  ;;  %v438_v54 = vsub.f32 %v433_v44, %v967_v48  ;;  %v440_v55 = vsub.f32 %v433_v44, %v955_v42 }
  0xdc   :  { %v481_v44 = vmul.f32 %v466_v14, %v995_v1 }
  0xdd   :  { %v435_v56 = vmul.f32 %v434_v45, %v971_v50  ;;  %v437_v57 = vmul.f32 %v436_v49, %v973_v51  ;;  %v439_v37 = vmul.f32 %v438_v54, %v975_v52  ;;  %v441_v58 = vmul.f32 %v440_v55, %v977_v53 }
  0xde   :  { %v488_v54 = vmul.f32 %v466_v14, %v997_v2 }
  0xdf   :  { %v442_v20 = vmax.f32 %v435_v56, %v437_v57  ;;  %v443_v59 = vmax.f32 %v439_v37, %v441_v58 }
  0xe1   :  { %v444_v21 = vmax.f32 %v442_v20, %v443_v59 }
  0xe3   :  { %v445_v60 = vsub.f32 %v435_v56, %v444_v21  ;;  %v446_v23 = vsub.f32 %v437_v57, %v444_v21  ;;  %v447_v61 = vsub.f32 %v439_v37, %v444_v21  ;;  %v448_v62 = vsub.f32 %v441_v58, %v444_v21 }
  0xe5   :  { %v450_v63 = vmul.f32 1.442695, %v445_v60  ;;  %v469_v3 = vmul.f32 1.442695, %v446_v23  ;;  %v476_v4 = vmul.f32 1.442695, %v447_v61 }
  0xe6   :  { %v483_v5 = vmul.f32 1.442695, %v448_v62 }
  0xe7   :  { %748 = vpow2.f32 %v450_v63 }
  0xe8   :  { %750 = vpow2.f32 %v469_v3 }
  0xe9   :  { %752 = vpow2.f32 %v476_v4 }
  0xea   :  { %754 = vpow2.f32 %v483_v5 }
  0xf1   :  { %v749_v7 = vpop.eup %748 }
  0xf2   :  { %v751_v8 = vpop.eup %750  ;;  %v457_v9 = vmul.f32 %v749_v7, %v455_v6 }
  0xf3   :  { %v753_v10 = vpop.eup %752  ;;  %v471_v11 = vmul.f32 %v751_v8, %v455_v6 }
  0xf4   :  { %v755_v17 = vpop.eup %754  ;;  %v478_v12 = vmul.f32 %v753_v10, %v455_v6  ;;  %v463_v18 = vsub.f32 %v457_v9, %v461_v15 }
  0xf5   :  { %v485_v19 = vmul.f32 %v755_v17, %v455_v6  ;;  %v472_v24 = vsub.f32 %v471_v11, %v461_v15 }
  0xf6   :  { %v465_v25 = vmul.f32 %v464_v13, %v463_v18  ;;  %v479_v27 = vsub.f32 %v478_v12, %v461_v15 }
  0xf7   :  { %v473_v30 = vmul.f32 %v472_v24, %v464_v13  ;;  %v486_v40 = vsub.f32 %v485_v19, %v461_v15 }
  0xf8   :  { %v468_v41 = vadd.f32 %v467_v26, %v465_v25  ;;  %v480_v43 = vmul.f32 %v479_v27, %v464_v13 }
  0xf9   :  { %v475_v45 = vadd.f32 %v474_v38, %v473_v30  ;;  %v487_v49 = vmul.f32 %v486_v40, %v464_v13 }
  0xfa   :  { %v482_v55 = vadd.f32 %v481_v44, %v480_v43  ;;  %v495_v56 = vand.u32 2147483647, %v468_v41 }
  0xfb   :  { %v489_v57 = vadd.f32 %v488_v54, %v487_v49  ;;  %v497_v37 = vand.u32 2147483647, %v475_v45 }
  0xfc   :  { %v499_v20 = vand.u32 2147483647, %v482_v55 }
  0xfd   :  { %v498_v58 = vadd.f32 %v497_v37, %v495_v56  ;;  %v501_v59 = vand.u32 2147483647, %v489_v57 }
  0xff   :  { %v500_v0 = vadd.f32 %v499_v20, %v498_v58 }
 0x101   :  { %v502_v21 = vadd.f32 %v501_v59, %v500_v0 }
 0x103   :  { %v503_v60 = vmax.f32 %v502_v21, 1e-12 }
 0x105   :  { %756 = vrcp.f32 %v503_v60 }
 0x10f   :  { %v757_v22 = vpop.eup %756 }
 0x110   :  { %v1050_v23 = vmul.f32 %v757_v22, %v468_v41  ;;  %v1052_v61 = vmul.f32 %v757_v22, %v475_v45  ;;  %v1054_v1 = vmul.f32 %v757_v22, %v482_v55  ;;  %v1056_v62 = vmul.f32 %v757_v22, %v489_v57 }
 0x112   :  { %v510_v2 = vmul.f32 -3.0, %v1050_v23  ;;  %v512_v63 = vmul.f32 -1.0, %v1052_v61  ;;  %v515_v5 = vmul.f32 3.0, %v1056_v62 }
 0x114   :  { %v513_v3 = vadd.f32 %v512_v63, %v510_v2 }
 0x116   :  { %v514_v4 = vadd.f32 %v513_v3, %v1054_v1 }
 0x118   :  { %v516_v6 = vadd.f32 %v515_v5, %v514_v4 }
 0x11a   :  { %v517_v7 = vmul.f32 %v516_v6, %v879_v28  ;;  %v518_v8 = vmul.f32 %v516_v6, %v884_v29  ;;  %v519_v9 = vmul.f32 %v516_v6, %v890_v31  ;;  %v520_v10 = vmul.f32 %v516_v6, %v895_v32 }
 0x11b   :  { %v521_v11 = vmul.f32 %v516_v6, %v900_v33  ;;  %v522_v13 = vmul.f32 %v516_v6, %v905_v34  ;;  %v523_v14 = vmul.f32 %v516_v6, %v910_v35  ;;  %v524_v15 = vmul.f32 %v516_v6, %v915_v36 }
 0x11c   :  { %v525_v17 = vsel %vm109_vm0, %v517_v7, 0.0  ;;  %v532_v12 = vsel %vm109_vm0, %v518_v8, 0.0  ;;  %v539_v28 = vsel %vm109_vm0, %v519_v9, 0.0  ;;  %v546_v29 = vsel %vm109_vm0, %v520_v10, 0.0 }
 0x11d   :  { %v526_v18 = vrot.slane %v525_v17, 4  ;;  %v533_v31 = vrot.slane %v532_v12, 4  ;;  %v540_v19 = vrot.slane %v539_v28, 4  ;;  %v547_v32 = vrot.slane %v546_v29, 4 }
 0x11e   :  { %v553_v33 = vsel %vm109_vm0, %v521_v11, 0.0  ;;  %v560_v34 = vsel %vm109_vm0, %v522_v13, 0.0  ;;  %v567_v35 = vsel %vm109_vm0, %v523_v14, 0.0  ;;  %v574_v36 = vsel %vm109_vm0, %v524_v15, 0.0 }
 0x11f   :  { %v527_v24 = vadd.f32 %v526_v18, %v525_v17  ;;  %v534_v25 = vadd.f32 %v533_v31, %v532_v12  ;;  %v541_v26 = vadd.f32 %v540_v19, %v539_v28  ;;  %v548_v27 = vadd.f32 %v547_v32, %v546_v29 }
 0x120   :  { %v554_v30 = vrot.slane %v553_v33, 4  ;;  %v561_v38 = vrot.slane %v560_v34, 4  ;;  %v568_v40 = vrot.slane %v567_v35, 4  ;;  %v575_v41 = vrot.slane %v574_v36, 4 }
 0x121   :  { %v528_v43 = vrot.slane %v527_v24, 2  ;;  %v535_v44 = vrot.slane %v534_v25, 2  ;;  %v542_v45 = vrot.slane %v541_v26, 2  ;;  %v549_v49 = vrot.slane %v548_v27, 2 }
 0x122   :  { %v555_v54 = vadd.f32 %v554_v30, %v553_v33  ;;  %v562_v55 = vadd.f32 %v561_v38, %v560_v34  ;;  %v569_v56 = vadd.f32 %v568_v40, %v567_v35  ;;  %v576_v57 = vadd.f32 %v575_v41, %v574_v36 }
 0x123   :  { %v529_v37 = vadd.f32 %v528_v43, %v527_v24  ;;  %v536_v58 = vadd.f32 %v535_v44, %v534_v25  ;;  %v543_v20 = vadd.f32 %v542_v45, %v541_v26  ;;  %v550_v0 = vadd.f32 %v549_v49, %v548_v27 }
 0x124   :  { %v556_v59 = vrot.slane %v555_v54, 2  ;;  %v563_v21 = vrot.slane %v562_v55, 2  ;;  %v570_v60 = vrot.slane %v569_v56, 2  ;;  %v577_v22 = vrot.slane %v576_v57, 2 }
 0x125   :  { %v530_v2 = vrot.slane %v529_v37, 1  ;;  %v537_v63 = vrot.slane %v536_v58, 1  ;;  %v544_v3 = vrot.slane %v543_v20, 1  ;;  %v551_v4 = vrot.slane %v550_v0, 1 }
 0x126   :  { %v557_v5 = vadd.f32 %v556_v59, %v555_v54  ;;  %v564_v7 = vadd.f32 %v563_v21, %v562_v55  ;;  %v571_v8 = vadd.f32 %v570_v60, %v569_v56  ;;  %v578_v9 = vadd.f32 %v577_v22, %v576_v57 }
 0x127   :  { %v531_v10 = vadd.f32 %v530_v2, %v529_v37  ;;  %v538_v17 = vadd.f32 %v537_v63, %v536_v58  ;;  %v545_v12 = vadd.f32 %v544_v3, %v543_v20  ;;  %v552_v28 = vadd.f32 %v551_v4, %v550_v0 }
 0x128   :  { %v558_v11 = vrot.slane %v557_v5, 1  ;;  %v565_v13 = vrot.slane %v564_v7, 1  ;;  %v572_v14 = vrot.slane %v571_v8, 1  ;;  %v579_v15 = vrot.slane %v578_v9, 1 }
 0x129   :  { %v581_v29 = vmul.f32 %v516_v6, %v936_v16 }
 0x12a   :  { %v559_v18 = vadd.f32 %v558_v11, %v557_v5  ;;  %v566_v31 = vadd.f32 %v565_v13, %v564_v7  ;;  %v573_v19 = vadd.f32 %v572_v14, %v571_v8  ;;  %v580_v32 = vadd.f32 %v579_v15, %v578_v9 }
 0x12b   :  { %v583_v33 = vrot.slane %v581_v29, 1  ;;  %v584_v34 = vrot.slane %v581_v29, 2  ;;  %v585_v35 = vrot.slane %v581_v29, 3  ;;  %v586_v36 = vrot.slane %v581_v29, 4 }
 0x12c   :  { %v587_v24 = vrot.slane %v581_v29, 5  ;;  %v588_v25 = vrot.slane %v581_v29, 6  ;;  %v589_v26 = vrot.slane %v581_v29, 7  ;;  %v598_v27 = vsub.f32 %v531_v10, %v581_v29 }
 0x12d   :  { %v599_v30 = vsub.f32 %v538_v17, %v583_v33  ;;  %v600_v38 = vsub.f32 %v545_v12, %v584_v34  ;;  %v601_v40 = vsub.f32 %v552_v28, %v585_v35  ;;  %v602_v41 = vsub.f32 %v559_v18, %v586_v36 }
 0x12e   :  { %v603_v43 = vsub.f32 %v566_v31, %v587_v24  ;;  %v604_v44 = vsub.f32 %v573_v19, %v588_v25  ;;  %v605_v45 = vsub.f32 %v580_v32, %v589_v26  ;;  %v606_v55 = vmul.f32 2.0, %v598_v27  ;;  %v665_v24 = vpop.permute.xlu1 %664 }
 0x12f   :  { %v607_v16 = vmul.f32 2.0, %v599_v30  ;;  %v608_v6 = vmul.f32 2.0, %v600_v38  ;;  %v609_v49 = vmul.f32 2.0, %v601_v40  ;;  %v610_v54 = vmul.f32 2.0, %v602_v41 }
 0x130   :  { %v611_v56 = vmul.f32 2.0, %v603_v43  ;;  %v612_v58 = vmul.f32 2.0, %v604_v44  ;;  %v613_v20 = vmul.f32 2.0, %v605_v45  ;;  %v668_v35 = vstv %s653_s15 }
 0x131   :  { %v622_v57 = vrot.slane %v607_v16, 7  ;;  %v624_v37 = vrot.slane %v608_v6, 6  ;;  %v626_v59 = vrot.slane %v609_v49, 5  ;;  %v628_v60 = vrot.slane %v610_v54, 4 }
 0x132   :  { %v630_v2 = vrot.slane %v611_v56, 3  ;;  %v632_v3 = vrot.slane %v612_v58, 2  ;;  %v634_v5 = vrot.slane %v613_v20, 1  ;;  %v670_v36 = vstv %s725_s14 }
 0x133   :  { %v623_v0 = vsel %vm208_vm1, %v622_v57, %v606_v55  ;;  %v671_v43 = vmul.f32 %v670_v36, %v1050_v23  ;;  %v678_v16 = vmul.f32 %v670_v36, %v1052_v61  ;;  %v685_v55 = vmul.f32 %v670_v36, %v1054_v1 }
 0x134   :  { %v625_v21 = vsel %vm211_vm2, %v624_v37, %v623_v0  ;;  %v692_v37 = vmul.f32 %v670_v36, %v1056_v62 }
 0x135   :  { %v627_v22 = vsel %vm214_vm3, %v626_v59, %v625_v21 }
 0x136   :  { %v629_v63 = vsel %vm217_vm4, %v628_v60, %v627_v22 }
 0x137   :  { %v631_v4 = vsel %vm220_vm5, %v630_v2, %v629_v63 }
 0x138   :  { %v633_v7 = vsel %vm223_vm6, %v632_v3, %v631_v4 }
 0x139   :  { %v635_v8 = vsel %vm226_vm7, %v634_v5, %v633_v7 }
 0x13a   :  { %v637_v9 = vsub.f32 %v948_v39, %v635_v8 }
 0x13c   :  { %v638_v10 = vsub.f32 %v637_v9, %v961_v46  ;;  %v640_v11 = vsub.f32 %v637_v9, %v964_v47  ;;  %v642_v13 = vsub.f32 %v637_v9, %v967_v48  ;;  %v644_v14 = vsub.f32 %v637_v9, %v955_v42 }
 0x13e   :  { %v639_v15 = vmul.f32 %v638_v10, %v971_v50  ;;  %v641_v17 = vmul.f32 %v640_v11, %v973_v51  ;;  %v643_v12 = vmul.f32 %v642_v13, %v975_v52  ;;  %v645_v28 = vmul.f32 %v644_v14, %v977_v53  ;;  %v659_v51 = vpop.permute.xlu0 %658 }
 0x140   :  { %v646_v29 = vmax.f32 %v639_v15, %v641_v17  ;;  %v647_v18 = vmax.f32 %v643_v12, %v645_v28 }
 0x142   :  { %v648_v31 = vmax.f32 %v646_v29, %v647_v18 }
 0x144   :  { %v649_v39 = vsub.f32 %v639_v15, %v648_v31  ;;  %v650_v19 = vsub.f32 %v641_v17, %v648_v31  ;;  %v651_v46 = vsub.f32 %v643_v12, %v648_v31  ;;  %v652_v32 = vsub.f32 %v645_v28, %v648_v31 }
 0x146   :  { %v654_v47 = vmul.f32 1.442695, %v649_v39  ;;  %v673_v33 = vmul.f32 1.442695, %v650_v19  ;;  %v680_v48 = vmul.f32 1.442695, %v651_v46 }
 0x147   :  { %695 = vst.msk [vmem:[%s1140_s9] sm:$0xff] %vm109_vm0, %v649_v39  ;;  %727 = vst.msk [vmem:[%s1140_s9 + $0x8] sm:$0xff] %vm109_vm0, %v650_v19  ;;  %v687_v42 = vmul.f32 1.442695, %v652_v32 }
 0x148   :  { %729 = vst.msk [vmem:[%s1140_s9 + $0x10] sm:$0xff] %vm109_vm0, %v651_v46  ;;  %731 = vst.msk [vmem:[%s1140_s9 + $0x18] sm:$0xff] %vm109_vm0, %v652_v32  ;;  %758 = vpow2.f32 %v654_v47 }
 0x149   :  { %760 = vpow2.f32 %v673_v33 }
 0x14a   :  { %762 = vpow2.f32 %v680_v48 }
 0x14b   :  { %764 = vpow2.f32 %v687_v42 }
 0x152   :  { %v759_v50 = vpop.eup %758 }
 0x153   :  { %v761_v52 = vpop.eup %760  ;;  %v661_v53 = vmul.f32 %v759_v50, %v659_v51 }
 0x154   :  { %v763_v34 = vpop.eup %762  ;;  %v675_v25 = vmul.f32 %v761_v52, %v659_v51 }
 0x155   :  { %v765_v26 = vpop.eup %764  ;;  %v667_v27 = vsub.f32 %v661_v53, %v665_v24  ;;  %v682_v30 = vmul.f32 %v763_v34, %v659_v51 }
 0x156   :  { %v676_v38 = vsub.f32 %v675_v25, %v665_v24  ;;  %v689_v40 = vmul.f32 %v765_v26, %v659_v51 }
 0x157   :  { %v669_v41 = vmul.f32 %v668_v35, %v667_v27  ;;  %v683_v44 = vsub.f32 %v682_v30, %v665_v24 }
 0x158   :  { %v677_v45 = vmul.f32 %v676_v38, %v668_v35  ;;  %v690_v6 = vsub.f32 %v689_v40, %v665_v24 }
 0x159   :  { %v672_v49 = vadd.f32 %v671_v43, %v669_v41  ;;  %v684_v54 = vmul.f32 %v683_v44, %v668_v35 }
 0x15a   :  { %v679_v56 = vadd.f32 %v678_v16, %v677_v45  ;;  %v691_v57 = vmul.f32 %v690_v6, %v668_v35 }
 0x15b   :  { %v686_v58 = vadd.f32 %v685_v55, %v684_v54  ;;  %694 = vst.msk [vmem:[%s1139_s8] sm:$0xff] %vm109_vm0, %v672_v49 }
 0x15c   :  { %v693_v23 = vadd.f32 %v692_v37, %v691_v57  ;;  %726 = vst.msk [vmem:[%s1139_s8 + $0x8] sm:$0xff] %vm109_vm0, %v679_v56 }
 0x15d   :  { %728 = vst.msk [vmem:[%s1139_s8 + $0x10] sm:$0xff] %vm109_vm0, %v686_v58 }
 0x15e   :  { %730 = vst.msk [vmem:[%s1139_s8 + $0x18] sm:$0xff] %vm109_vm0, %v693_v23 }
 0x15f   :  { %716 = vsyncpa [#allocation4], 1 }

</bundles_post_ra>
